<compile_context>
chip_gen: v7x
topology: tpu7x:2x2x1
jax: 0.10.0
libtpu: 0.0.40
codegen_flags: <defaults>
</compile_context>

<pallas_src>
import functools
import math

import jax
import jax.numpy as jnp
from jax.experimental import pallas as pl
from jax.experimental.pallas import tpu as pltpu

_LANE = 128
_LN_EPS = 1e-5


# ----------------------------------------------------------------------------
# Tiling / compiler-parameter helpers (generation aware).
# ----------------------------------------------------------------------------
def _round_up(x, m):
    return (x + m - 1) // m * m


def _vmem_budget():
    """Scoped-VMEM limit and per-kernel working-set budget per generation."""
    try:
        phys = int(pltpu.get_tpu_info().vmem_capacity_bytes)
    except Exception:
        phys = 64 * 1024 * 1024                 # conservative (v7x per-TC)
    phys = max(phys, 32 * 1024 * 1024)
    vmem_limit = min(phys * 3 // 4, 96 * 1024 * 1024)  # v7x ~48 MiB, v5e/v6e 96 MiB
    budget = vmem_limit // 2                            # double-buffered working set
    return vmem_limit, budget


def _choose_tiling(n_batch, hw, dim, hidden_ch):
    """One lane-dense spatial tile shared by every kernel of the stack, sized
    from the largest per-column working set (the fused feed-forward block)."""
    vmem_limit, budget = _vmem_budget()
    per_col = (2 * dim + 2 * dim + hidden_ch + 4) * 4   # f32 bytes per column
    tile = max(_LANE, (budget // per_col) // _LANE * _LANE)
    hw_lane = _round_up(hw, _LANE)
    tile = min(tile, 32768, hw_lane)
    # Keep >= 2 grid steps so both TensorCores of a dual-TC chip get work.
    if n_batch * pl.cdiv(hw_lane, tile) < 2 and tile >= 2 * _LANE:
        tile = max(_LANE, (tile // 2) // _LANE * _LANE)
    hw_pad = _round_up(hw, tile)
    return tile, hw_pad, hw_pad // tile, vmem_limit


def _cparams(vmem_limit):
    return pltpu.CompilerParams(
        dimension_semantics=("parallel", "parallel"),
        vmem_limit_bytes=int(vmem_limit))


def _col(v):
    return jnp.reshape(v, (-1, 1)).astype(jnp.float32)


# ----------------------------------------------------------------------------
# In-kernel building blocks.
# ----------------------------------------------------------------------------
def _ln_inline(x, g, b, eps):
    # torch.var(dim=1, unbiased=False).sqrt(); divide by (std + eps); scale/shift.
    mean = jnp.mean(x, axis=0, keepdims=True)
    var = jnp.mean(jnp.square(x - mean), axis=0, keepdims=True)
    inv = pl.reciprocal(jnp.sqrt(var) + eps, approx=True)   # EUP slot, off VALU
    return (x - mean) * inv * g + b


def _erf_poly(x):
    # Abramowitz & Stegun 7.1.26 (|err| <= 1.5e-7), built only from ops Mosaic
    # lowers on every generation (abs/exp/mul/add/div/where).
    p = 0.3275911
    a1, a2, a3, a4, a5 = 0.254829592, -0.284496736, 1.421413741, -1.453152027, 1.061405429
    ax = jnp.abs(x)
    t = 1.0 / (1.0 + p * ax)
    poly = ((((a5 * t + a4) * t + a3) * t + a2) * t + a1) * t
    y = 1.0 - poly * jnp.exp(-ax * ax)
    return jnp.where(x < 0.0, -y, y)


def _gelu_erf(x):
    return 0.5 * x * (1.0 + _erf_poly(x * 0.7071067811865476))


# ----------------------------------------------------------------------------
# Pallas kernel bodies.
# ----------------------------------------------------------------------------
def _layernorm_kernel(x_ref, g_ref, b_ref, o_ref, *, eps):
    x = x_ref[...].astype(jnp.float32)                       # (C, T)
    o_ref[...] = _ln_inline(x, g_ref[...], b_ref[...], eps).astype(o_ref.dtype)


def _attn_block_kernel(x_ref, gq_ref, gk_ref, gv_ref, wq_ref, wk_ref, wv_ref,
                       bsum_ref, g_ref, b_ref, o_ref, *, eps):
    # x (C,T); gq (C,1) channel gate; gk/gv (1,T) column gates;
    # wq/wk/wv (C,C) folded W_out-slab @ W_branch; bsum (C,1) folded bias.
    x = x_ref[...].astype(jnp.float32)
    xn = _ln_inline(x, g_ref[...], b_ref[...], eps)          # PreNorm in-register
    acc = jnp.dot(wq_ref[...], xn * gq_ref[...], preferred_element_type=jnp.float32)
    acc = acc + jnp.dot(wk_ref[...], xn * gk_ref[...], preferred_element_type=jnp.float32)
    acc = acc + jnp.dot(wv_ref[...], xn * gv_ref[...], preferred_element_type=jnp.float32)
    o_ref[...] = (acc + bsum_ref[...] + x).astype(o_ref.dtype)   # fused residual


def _ff_block_kernel(x_ref, w1_ref, b1_ref, w2_ref, b2_ref, g_ref, b_ref, o_ref, *, eps):
    x = x_ref[...].astype(jnp.float32)
    xn = _ln_inline(x, g_ref[...], b_ref[...], eps)          # PreNorm in-register
    h = jnp.dot(w1_ref[...], xn, preferred_element_type=jnp.float32) + b1_ref[...]
    h = _gelu_erf(h)                                         # fused GELU, never in HBM
    acc = jnp.dot(w2_ref[...], h, preferred_element_type=jnp.float32)
    o_ref[...] = (acc + b2_ref[...] + x).astype(o_ref.dtype)  # fused residual


# ----------------------------------------------------------------------------
# pallas_call wrappers (all operate on the padded (N, C, HWpad) flat layout).
# ----------------------------------------------------------------------------
def layernorm_flat(xf, g, b, *, tile, n_tiles, vmem_limit, eps=_LN_EPS):
    n, c, hw_pad = xf.shape
    return pl.pallas_call(
        functools.partial(_layernorm_kernel, eps=eps),
        out_shape=jax.ShapeDtypeStruct(xf.shape, xf.dtype),
        grid=(n, n_tiles),
        in_specs=[
            pl.BlockSpec((None, c, tile), lambda i, j: (i, 0, j)),
            pl.BlockSpec((c, 1), lambda i, j: (0, 0)),
            pl.BlockSpec((c, 1), lambda i, j: (0, 0)),
        ],
        out_specs=pl.BlockSpec((None, c, tile), lambda i, j: (i, 0, j)),
        compiler_params=_cparams(vmem_limit),
        cost_estimate=pl.CostEstimate(
            flops=8 * n * c * hw_pad, transcendentals=2 * n * hw_pad,
            bytes_accessed=4 * (2 * n * c * hw_pad + 2 * c)),
    )(xf, _col(g), _col(b))


def attn_block_flat(xf, gq, gk, gv, wq, wk, wv, bsum, g, b,
                    *, tile, n_tiles, vmem_limit, eps=_LN_EPS):
    n, c, hw_pad = xf.shape
    return pl.pallas_call(
        functools.partial(_attn_block_kernel, eps=eps),
        out_shape=jax.ShapeDtypeStruct(xf.shape, xf.dtype),
        grid=(n, n_tiles),
        in_specs=[
            pl.BlockSpec((None, c, tile), lambda i, j: (i, 0, j)),   # x (LN in + residual)
            pl.BlockSpec((None, c, 1), lambda i, j: (i, 0, 0)),      # channel gate
            pl.BlockSpec((None, 1, tile), lambda i, j: (i, 0, j)),   # H gate per column
            pl.BlockSpec((None, 1, tile), lambda i, j: (i, 0, j)),   # W gate per column
            pl.BlockSpec((c, c), lambda i, j: (0, 0)),               # folded Wq (resident)
            pl.BlockSpec((c, c), lambda i, j: (0, 0)),               # folded Wk
            pl.BlockSpec((c, c), lambda i, j: (0, 0)),               # folded Wv
            pl.BlockSpec((c, 1), lambda i, j: (0, 0)),               # folded bias
            pl.BlockSpec((c, 1), lambda i, j: (0, 0)),               # LN gamma
            pl.BlockSpec((c, 1), lambda i, j: (0, 0)),               # LN beta
        ],
        out_specs=pl.BlockSpec((None, c, tile), lambda i, j: (i, 0, j)),
        compiler_params=_cparams(vmem_limit),
        cost_estimate=pl.CostEstimate(
            flops=n * hw_pad * (6 * c * c + 14 * c),
            transcendentals=2 * n * hw_pad,
            bytes_accessed=4 * (2 * n * c * hw_pad + 2 * n * hw_pad
                                + n * c + 3 * c * c + 4 * c)),
    )(xf,
      gq.astype(jnp.float32), gk.astype(jnp.float32), gv.astype(jnp.float32),
      wq.astype(jnp.float32), wk.astype(jnp.float32), wv.astype(jnp.float32),
      bsum.astype(jnp.float32), _col(g), _col(b))


def ff_block_flat(xf, w1, b1, w2, b2, g, b, *, tile, n_tiles, vmem_limit, eps=_LN_EPS):
    n, c, hw_pad = xf.shape
    ch = w1.shape[0]
    return pl.pallas_call(
        functools.partial(_ff_block_kernel, eps=eps),
        out_shape=jax.ShapeDtypeStruct(xf.shape, xf.dtype),
        grid=(n, n_tiles),
        in_specs=[
            pl.BlockSpec((None, c, tile), lambda i, j: (i, 0, j)),
            pl.BlockSpec((ch, c), lambda i, j: (0, 0)),
            pl.BlockSpec((ch, 1), lambda i, j: (0, 0)),
            pl.BlockSpec((c, ch), lambda i, j: (0, 0)),
            pl.BlockSpec((c, 1), lambda i, j: (0, 0)),
            pl.BlockSpec((c, 1), lambda i, j: (0, 0)),
            pl.BlockSpec((c, 1), lambda i, j: (0, 0)),
        ],
        out_specs=pl.BlockSpec((None, c, tile), lambda i, j: (i, 0, j)),
        compiler_params=_cparams(vmem_limit),
        cost_estimate=pl.CostEstimate(
            flops=4 * n * hw_pad * c * ch + 12 * n * hw_pad * c,
            transcendentals=n * hw_pad * (ch + 2),
            bytes_accessed=4 * (2 * n * c * hw_pad + 2 * c * ch + ch + 3 * c)),
    )(xf,
      w1.reshape(ch, c).astype(jnp.float32), _col(b1),
      w2.reshape(c, ch).astype(jnp.float32), _col(b2),
      _col(g), _col(b))


# ----------------------------------------------------------------------------
# Small jnp glue: ECA pooled gates (no transposes, tiny outputs) and
# weight folding for the fused attention block.
# ----------------------------------------------------------------------------
def _eca_kernel_size(channels, gamma=2, b=1):
    k = int(abs((math.log(channels, 2) + b) / gamma))
    return k if k % 2 else k + 1


def _eca_conv1d_same(pooled, w1d):
    # pooled: (N, L); torch Conv1d(1, 1, k, padding=(k-1)//2, bias=False).
    k = w1d.shape[0]
    pad = (k - 1) // 2
    xp = jnp.pad(pooled, ((0, 0), (pad, pad)))
    L = pooled.shape[1]
    out = jnp.zeros_like(pooled)
    for i in range(k):                              # k is tiny -> static unroll
        out = out + w1d[i] * xp[:, i:i + L]
    return out


def _eca_gates(xf, hw, H, W, ap, eps=_LN_EPS):
    """ECA gates for one attention block, computed from the PreNorm output
    without NCHW transposes or gated-tensor materialization."""
    n, c, hw_pad = xf.shape
    xs = xf[:, :, :hw].reshape(n, c, H, W)
    mean = jnp.mean(xs, axis=1, keepdims=True)
    var = jnp.mean(jnp.square(xs - mean), axis=1, keepdims=True)
    xn = ((xs - mean) / (jnp.sqrt(var) + eps) * ap["norm_g"][None, :, None, None]
          + ap["norm_b"][None, :, None, None])
    pooled_c = jnp.mean(xn, axis=(2, 3))            # (N, C)  ECANet   (q)
    pooled_h = jnp.mean(xn, axis=(1, 3))            # (N, H)  ECANetH  (k)
    pooled_w = jnp.mean(xn, axis=(1, 2))            # (N, W)  ECANetW  (v)
    gc = jax.nn.sigmoid(_eca_conv1d_same(pooled_c, ap["to_q"]["eca_w"]))
    gh = jax.nn.sigmoid(_eca_conv1d_same(pooled_h, ap["to_k"]["eca_w"]))
    gw = jax.nn.sigmoid(_eca_conv1d_same(pooled_w, ap["to_v"]["eca_w"]))
    gk_cols = jnp.broadcast_to(gh[:, :, None], (n, H, W)).reshape(n, 1, hw)
    gv_cols = jnp.broadcast_to(gw[:, None, :], (n, H, W)).reshape(n, 1, hw)
    if hw_pad != hw:
        pad = ((0, 0), (0, 0), (0, hw_pad - hw))
        gk_cols = jnp.pad(gk_cols, pad)
        gv_cols = jnp.pad(gv_cols, pad)
    return gc[:, :, None], gk_cols, gv_cols


def _fold_attn_weights(ap):
    """Fold the q/k/v 1x1 convs and the (3*inner)->dim output conv into three
    (dim, dim) matrices + one bias, so the concat never exists in HBM."""
    wo = ap["out_w"].reshape(ap["out_w"].shape[0], -1)        # (dim, 3*inner)
    inner = ap["to_q"]["proj_w"].shape[0]
    wo_q, wo_k, wo_v = wo[:, :inner], wo[:, inner:2 * inner], wo[:, 2 * inner:]
    wq = ap["to_q"]["proj_w"].reshape(inner, -1)
    wk = ap["to_k"]["proj_w"].reshape(inner, -1)
    wv = ap["to_v"]["proj_w"].reshape(inner, -1)
    wfq, wfk, wfv = wo_q @ wq, wo_k @ wk, wo_v @ wv           # (dim, dim) each
    bsum = (wo_q @ ap["to_q"]["proj_b"] + wo_k @ ap["to_k"]["proj_b"]
            + wo_v @ ap["to_v"]["proj_b"] + ap["out_b"])
    return wfq, wfk, wfv, bsum.reshape(-1, 1)


# ----------------------------------------------------------------------------
# Forward passes.
# ----------------------------------------------------------------------------
def _stem(params, x):
    x = jax.lax.conv_general_dilated(
        x, params["stem_w"], window_strides=(1, 1), padding=((1, 1), (1, 1)),
        dimension_numbers=("NCHW", "OIHW", "NCHW"))
    x = x + params["stem_b"][None, :, None, None]
    # TODO(synk): AKConv is referenced by PreConv but its definition is not part
    # of the provided module; it is treated as identity here.
    return x


def preconv_forward_pallas(params, x):
    x = _stem(params, x)
    n, c, H, W = x.shape
    hw = H * W
    hidden_ch = params["layers"][0]["ff"]["w1"].shape[0]
    tile, hw_pad, n_tiles, vmem_limit = _choose_tiling(n, hw, c, hidden_ch)
    kw = dict(tile=tile, n_tiles=n_tiles, vmem_limit=vmem_limit)

    xf = x.reshape(n, c, hw)
    if hw_pad != hw:                       # pad ONCE; padded layout kept throughout
        xf = jnp.pad(xf, ((0, 0), (0, 0), (0, hw_pad - hw)))

    xf = layernorm_flat(xf, params["ln0_g"], params["ln0_b"], **kw)

    for layer in params["layers"]:
        ap, fp = layer["attn"], layer["ff"]
        gq, gk, gv = _eca_gates(xf, hw, H, W, ap)
        wfq, wfk, wfv, bsum = _fold_attn_weights(ap)
        xf = attn_block_flat(xf, gq, gk, gv, wfq, wfk, wfv, bsum,
                             ap["norm_g"], ap["norm_b"], **kw)
        xf = ff_block_flat(xf, fp["w1"], fp["b1"], fp["w2"], fp["b2"],
                           fp["norm_g"], fp["norm_b"], **kw)

    return xf[:, :, :hw].reshape(n, c, H, W)        # slice ONCE at the end


# ----------------------------------------------------------------------------
# Pure-jnp reference path (mirrors the PyTorch module op-by-op).
# ----------------------------------------------------------------------------
def _layernorm_ref(x, g, b, eps=_LN_EPS):
    mean = jnp.mean(x, axis=1, keepdims=True)
    var = jnp.mean(jnp.square(x - mean), axis=1, keepdims=True)
    return (x - mean) / (jnp.sqrt(var) + eps) * g[None, :, None, None] + b[None, :, None, None]


def _pointwise_ref(x, w, b):
    w2 = w.reshape(w.shape[0], -1)
    return jnp.einsum("nchw,oc->nohw", x, w2) + b[None, :, None, None]


def _eca_branch_ref(p, x, mode):
    if mode == "h":
        xp = jnp.transpose(x, (0, 2, 1, 3))
    elif mode == "w":
        xp = jnp.transpose(x, (0, 3, 2, 1))
    else:
        xp = x
    pooled = jnp.mean(xp, axis=(2, 3))
    gate = jax.nn.sigmoid(_eca_conv1d_same(pooled, p["eca_w"]))
    gated = xp * gate[:, :, None, None]
    if mode == "h":
        gated = jnp.transpose(gated, (0, 2, 1, 3))
    elif mode == "w":
        gated = jnp.transpose(gated, (0, 3, 2, 1))
    return _pointwise_ref(gated, p["proj_w"], p["proj_b"])


def _attention_ref(p, x):
    q = _eca_branch_ref(p["to_q"], x, "c")
    k = _eca_branch_ref(p["to_k"], x, "h")
    v = _eca_branch_ref(p["to_v"], x, "w")
    out = jnp.concatenate([q, k, v], axis=1)
    return _pointwise_ref(out, p["out_w"], p["out_b"])


def _feedforward_ref(p, x):
    h = _pointwise_ref(x, p["w1"], p["b1"])
    h = jax.nn.gelu(h, approximate=False)
    return _pointwise_ref(h, p["w2"], p["b2"])


def preconv_forward_ref(params, x):
    x = _stem(params, x)
    x = _layernorm_ref(x, params["ln0_g"], params["ln0_b"])
    for layer in params["layers"]:
        ap, fp = layer["attn"], layer["ff"]
        xn = _layernorm_ref(x, ap["norm_g"], ap["norm_b"])
        x = _attention_ref(ap, xn) + x
        xn = _layernorm_ref(x, fp["norm_g"], fp["norm_b"])
        x = _feedforward_ref(fp, xn) + x
    return x


# ----------------------------------------------------------------------------
# Deterministic parameter init (nn.Conv2d/Conv1d shapes & uniform bounds).
# ----------------------------------------------------------------------------
def init_preconv_params(key, in_channels, out_channels, depth=2, heads=2,
                        dim_head=64, mlp_mult=4):
    dim = out_channels
    inner = heads * dim_head
    k_eca = _eca_kernel_size(dim)

    kit = iter(jax.random.split(key, 64))

    def conv2d_init(cout, cin, kh=1, kw=1):
        fan_in = cin * kh * kw
        bound = 1.0 / math.sqrt(fan_in)
        w = jax.random.uniform(next(kit), (cout, cin, kh, kw), jnp.float32,
                               minval=-bound, maxval=bound)
        b = jax.random.uniform(next(kit), (cout,), jnp.float32,
                               minval=-bound, maxval=bound)
        return w, b

    def eca_init():
        bound = 1.0 / math.sqrt(k_eca)
        w1d = jax.random.uniform(next(kit), (k_eca,), jnp.float32,
                                 minval=-bound, maxval=bound)
        pw, pb = conv2d_init(inner, dim)
        return {"eca_w": w1d, "proj_w": pw, "proj_b": pb}

    params = {}
    params["stem_w"], params["stem_b"] = conv2d_init(out_channels, in_channels, 3, 3)
    params["ln0_g"] = jnp.ones((dim,), jnp.float32)
    params["ln0_b"] = jnp.zeros((dim,), jnp.float32)

    layers = []
    for _ in range(depth):
        attn = {"norm_g": jnp.ones((dim,), jnp.float32),
                "norm_b": jnp.zeros((dim,), jnp.float32),
                "to_q": eca_init(), "to_k": eca_init(), "to_v": eca_init()}
        attn["out_w"], attn["out_b"] = conv2d_init(dim, inner * 3)
        ff = {"norm_g": jnp.ones((dim,), jnp.float32),
              "norm_b": jnp.zeros((dim,), jnp.float32)}
        ff["w1"], ff["b1"] = conv2d_init(dim * mlp_mult, dim)
        ff["w2"], ff["b2"] = conv2d_init(dim, dim * mlp_mult)
        layers.append({"attn": attn, "ff": ff})
    params["layers"] = layers
    return params


if __name__ == "__main__":
    key = jax.random.PRNGKey(0)
    k_x1, k_p1, k_x2, k_p2 = jax.random.split(key, 4)

    fwd = jax.jit(preconv_forward_pallas)
    ref = jax.jit(preconv_forward_ref)

    # Case 1: batch=2, in_channels=3, dim=8, 16x16 (HW=256, exactly lane-dense).
    x1 = jax.random.normal(k_x1, (2, 3, 16, 16), dtype=jnp.float32)
    p1 = init_preconv_params(k_p1, 3, 8)
    y1 = jax.block_until_ready(fwd(p1, x1))
    y1r = jax.block_until_ready(ref(p1, x1))
    assert y1.shape == (2, 8, 16, 16)
    err1 = float(jnp.max(jnp.abs(y1 - y1r)))
    assert jnp.allclose(y1, y1r, atol=2e-2, rtol=2e-2), "case1 mismatch: %e" % err1

    # Case 2: ragged spatial tail (HW=400 -> padded once to 512), dim=16
    # (exercises the ECA k=3 conv1d and larger in-kernel matmuls).
    x2 = jax.random.normal(k_x2, (2, 3, 20, 20), dtype=jnp.float32)
    p2 = init_preconv_params(k_p2, 3, 16)
    y2 = jax.block_until_ready(fwd(p2, x2))
    y2r = jax.block_until_ready(ref(p2, x2))
    assert y2.shape == (2, 16, 20, 20)
    err2 = float(jnp.max(jnp.abs(y2 - y2r)))
    assert jnp.allclose(y2, y2r, atol=2e-2, rtol=2e-2), "case2 mismatch: %e" % err2

    print("KERNEL_OK")
</pallas_src>

<mosaic_0001>
module attributes {stable_mosaic.version = 11 : i64} {
  func.func @_layernorm_kernel(%arg0: i32, %arg1: i32, %arg2: memref<1x8x256xf32, #tpu.memory_space<vmem>>, %arg3: memref<8x1xf32, #tpu.memory_space<vmem>>, %arg4: memref<8x1xf32, #tpu.memory_space<vmem>>, %arg5: memref<1x8x256xf32, #tpu.memory_space<vmem>>) attributes {dimension_semantics = [#tpu.dimension_semantics<parallel>, #tpu.dimension_semantics<parallel>], iteration_bounds = array<i64: 2, 1>, scalar_prefetch = 0 : i64, scratch_operands = 0 : i64, tpu.core_type = #tpu.core_type<tc>, window_params = [{transform_indices = @transform_0, window_bounds = array<i64: 1, 8, 256>}, {pipeline_mode = #tpu.pipeline_mode<synchronous>, transform_indices = @transform_1, window_bounds = array<i64: 8, 1>}, {pipeline_mode = #tpu.pipeline_mode<synchronous>, transform_indices = @transform_2, window_bounds = array<i64: 8, 1>}, {transform_indices = @transform_3, window_bounds = array<i64: 1, 8, 256>}]} {
    %c0 = arith.constant 0 : index
    %c0_0 = arith.constant 0 : index
    %c0_1 = arith.constant 0 : index
    %0 = vector.load %arg2[%c0, %c0_0, %c0_1] : memref<1x8x256xf32, #tpu.memory_space<vmem>>, vector<1x8x256xf32>
    %1 = vector.shape_cast %0 : vector<1x8x256xf32> to vector<8x256xf32>
    %c0_2 = arith.constant 0 : index
    %c0_3 = arith.constant 0 : index
    %2 = vector.load %arg3[%c0_2, %c0_3] : memref<8x1xf32, #tpu.memory_space<vmem>>, vector<8x1xf32>
    %c0_4 = arith.constant 0 : index
    %c0_5 = arith.constant 0 : index
    %3 = vector.load %arg4[%c0_4, %c0_5] : memref<8x1xf32, #tpu.memory_space<vmem>>, vector<8x1xf32>
    %cst = arith.constant dense<0.000000e+00> : vector<256xf32>
    %4 = vector.multi_reduction <add>, %1, %cst [0] : vector<8x256xf32> to vector<256xf32>
    %5 = vector.shape_cast %4 : vector<256xf32> to vector<1x256xf32>
    %cst_6 = arith.constant 8.000000e+00 : f32
    %6 = vector.broadcast %cst_6 : f32 to vector<1x256xf32>
    %7 = arith.divf %5, %6 : vector<1x256xf32>
    %8 = vector.broadcast %7 : vector<1x256xf32> to vector<8x256xf32>
    %9 = arith.subf %1, %8 : vector<8x256xf32>
    %10 = arith.mulf %9, %9 : vector<8x256xf32>
    %cst_7 = arith.constant dense<0.000000e+00> : vector<256xf32>
    %11 = vector.multi_reduction <add>, %10, %cst_7 [0] : vector<8x256xf32> to vector<256xf32>
    %12 = vector.shape_cast %11 : vector<256xf32> to vector<1x256xf32>
    %cst_8 = arith.constant 8.000000e+00 : f32
    %13 = vector.broadcast %cst_8 : f32 to vector<1x256xf32>
    %14 = arith.divf %12, %13 : vector<1x256xf32>
    %15 = math.sqrt %14 : vector<1x256xf32>
    %cst_9 = arith.constant 9.99999974E-6 : f32
    %16 = vector.broadcast %cst_9 : f32 to vector<1x256xf32>
    %17 = arith.addf %15, %16 : vector<1x256xf32>
    %18 = tpu.reciprocal %17 {approx = true} : vector<1x256xf32> -> vector<1x256xf32>
    %19 = vector.broadcast %7 : vector<1x256xf32> to vector<8x256xf32>
    %20 = arith.subf %1, %19 : vector<8x256xf32>
    %21 = vector.broadcast %18 : vector<1x256xf32> to vector<8x256xf32>
    %22 = arith.mulf %20, %21 : vector<8x256xf32>
    %23 = vector.broadcast %2 : vector<8x1xf32> to vector<8x256xf32>
    %24 = arith.mulf %22, %23 : vector<8x256xf32>
    %25 = vector.broadcast %3 : vector<8x1xf32> to vector<8x256xf32>
    %26 = arith.addf %24, %25 : vector<8x256xf32>
    %c0_10 = arith.constant 0 : index
    %c0_11 = arith.constant 0 : index
    %c0_12 = arith.constant 0 : index
    %27 = vector.load %arg5[%c0_10, %c0_11, %c0_12] : memref<1x8x256xf32, #tpu.memory_space<vmem>>, vector<1x8x256xf32>
    %28 = vector.shape_cast %27 : vector<1x8x256xf32> to vector<8x256xf32>
    %29 = vector.shape_cast %26 : vector<8x256xf32> to vector<1x8x256xf32>
    tpu.vector_store %arg5[%c0_10, %c0_11, %c0_12], %29 {strides = array<i32>} : memref<1x8x256xf32, #tpu.memory_space<vmem>>, vector<1x8x256xf32>,
    return
  }
  func.func @transform_0(%arg0: i32, %arg1: i32) -> (i32, i32, i32) {
    %c0_i32 = arith.constant 0 : i32
    %c0_i32_0 = arith.constant 0 : i32
    return %arg0, %c0_i32, %arg1 : i32, i32, i32
  }
  func.func @transform_1(%arg0: i32, %arg1: i32) -> (i32, i32) {
    %c0_i32 = arith.constant 0 : i32
    %c0_i32_0 = arith.constant 0 : i32
    %c0_i32_1 = arith.constant 0 : i32
    return %c0_i32, %c0_i32_0 : i32, i32
  }
  func.func @transform_2(%arg0: i32, %arg1: i32) -> (i32, i32) {
    %c0_i32 = arith.constant 0 : i32
    %c0_i32_0 = arith.constant 0 : i32
    %c0_i32_1 = arith.constant 0 : i32
    return %c0_i32, %c0_i32_0 : i32, i32
  }
  func.func @transform_3(%arg0: i32, %arg1: i32) -> (i32, i32, i32) {
    %c0_i32 = arith.constant 0 : i32
    %c0_i32_0 = arith.constant 0 : i32
    return %arg0, %c0_i32, %arg1 : i32, i32, i32
  }
}

module attributes {stable_mosaic.version = 11 : i64} {
  func.func @_attn_block_kernel(%arg0: i32, %arg1: i32, %arg2: memref<1x8x256xf32, #tpu.memory_space<vmem>>, %arg3: memref<1x8x1xf32, #tpu.memory_space<vmem>>, %arg4: memref<1x1x256xf32, #tpu.memory_space<vmem>>, %arg5: memref<1x1x256xf32, #tpu.memory_space<vmem>>, %arg6: memref<8x8xf32, #tpu.memory_space<vmem>>, %arg7: memref<8x8xf32, #tpu.memory_space<vmem>>, %arg8: memref<8x8xf32, #tpu.memory_space<vmem>>, %arg9: memref<8x1xf32, #tpu.memory_space<vmem>>, %arg10: memref<8x1xf32, #tpu.memory_space<vmem>>, %arg11: memref<8x1xf32, #tpu.memory_space<vmem>>, %arg12: memref<1x8x256xf32, #tpu.memory_space<vmem>>) attributes {dimension_semantics = [#tpu.dimension_semantics<parallel>, #tpu.dimension_semantics<parallel>], iteration_bounds = array<i64: 2, 1>, scalar_prefetch = 0 : i64, scratch_operands = 0 : i64, tpu.core_type = #tpu.core_type<tc>, window_params = [{transform_indices = @transform_0, window_bounds = array<i64: 1, 8, 256>}, {transform_indices = @transform_1, window_bounds = array<i64: 1, 8, 1>}, {transform_indices = @transform_2, window_bounds = array<i64: 1, 1, 256>}, {transform_indices = @transform_3, window_bounds = array<i64: 1, 1, 256>}, {pipeline_mode = #tpu.pipeline_mode<synchronous>, transform_indices = @transform_4, window_bounds = array<i64: 8, 8>}, {pipeline_mode = #tpu.pipeline_mode<synchronous>, transform_indices = @transform_5, window_bounds = array<i64: 8, 8>}, {pipeline_mode = #tpu.pipeline_mode<synchronous>, transform_indices = @transform_6, window_bounds = array<i64: 8, 8>}, {pipeline_mode = #tpu.pipeline_mode<synchronous>, transform_indices = @transform_7, window_bounds = array<i64: 8, 1>}, {pipeline_mode = #tpu.pipeline_mode<synchronous>, transform_indices = @transform_8, window_bounds = array<i64: 8, 1>}, {pipeline_mode = #tpu.pipeline_mode<synchronous>, transform_indices = @transform_9, window_bounds = array<i64: 8, 1>}, {transform_indices = @transform_10, window_bounds = array<i64: 1, 8, 256>}]} {
    %c0 = arith.constant 0 : index
    %c0_0 = arith.constant 0 : index
    %c0_1 = arith.constant 0 : index
    %0 = vector.load %arg2[%c0, %c0_0, %c0_1] : memref<1x8x256xf32, #tpu.memory_space<vmem>>, vector<1x8x256xf32>
    %1 = vector.shape_cast %0 : vector<1x8x256xf32> to vector<8x256xf32>
    %c0_2 = arith.constant 0 : index
    %c0_3 = arith.constant 0 : index
    %2 = vector.load %arg10[%c0_2, %c0_3] : memref<8x1xf32, #tpu.memory_space<vmem>>, vector<8x1xf32>
    %c0_4 = arith.constant 0 : index
    %c0_5 = arith.constant 0 : index
    %3 = vector.load %arg11[%c0_4, %c0_5] : memref<8x1xf32, #tpu.memory_space<vmem>>, vector<8x1xf32>
    %cst = arith.constant dense<0.000000e+00> : vector<256xf32>
    %4 = vector.multi_reduction <add>, %1, %cst [0] : vector<8x256xf32> to vector<256xf32>
    %5 = vector.shape_cast %4 : vector<256xf32> to vector<1x256xf32>
    %cst_6 = arith.constant 8.000000e+00 : f32
    %6 = vector.broadcast %cst_6 : f32 to vector<1x256xf32>
    %7 = arith.divf %5, %6 : vector<1x256xf32>
    %8 = vector.broadcast %7 : vector<1x256xf32> to vector<8x256xf32>
    %9 = arith.subf %1, %8 : vector<8x256xf32>
    %10 = arith.mulf %9, %9 : vector<8x256xf32>
    %cst_7 = arith.constant dense<0.000000e+00> : vector<256xf32>
    %11 = vector.multi_reduction <add>, %10, %cst_7 [0] : vector<8x256xf32> to vector<256xf32>
    %12 = vector.shape_cast %11 : vector<256xf32> to vector<1x256xf32>
    %cst_8 = arith.constant 8.000000e+00 : f32
    %13 = vector.broadcast %cst_8 : f32 to vector<1x256xf32>
    %14 = arith.divf %12, %13 : vector<1x256xf32>
    %15 = math.sqrt %14 : vector<1x256xf32>
    %cst_9 = arith.constant 9.99999974E-6 : f32
    %16 = vector.broadcast %cst_9 : f32 to vector<1x256xf32>
    %17 = arith.addf %15, %16 : vector<1x256xf32>
    %18 = tpu.reciprocal %17 {approx = true} : vector<1x256xf32> -> vector<1x256xf32>
    %19 = vector.broadcast %7 : vector<1x256xf32> to vector<8x256xf32>
    %20 = arith.subf %1, %19 : vector<8x256xf32>
    %21 = vector.broadcast %18 : vector<1x256xf32> to vector<8x256xf32>
    %22 = arith.mulf %20, %21 : vector<8x256xf32>
    %23 = vector.broadcast %2 : vector<8x1xf32> to vector<8x256xf32>
    %24 = arith.mulf %22, %23 : vector<8x256xf32>
    %25 = vector.broadcast %3 : vector<8x1xf32> to vector<8x256xf32>
    %26 = arith.addf %24, %25 : vector<8x256xf32>
    %c0_10 = arith.constant 0 : index
    %c0_11 = arith.constant 0 : index
    %27 = vector.load %arg6[%c0_10, %c0_11] : memref<8x8xf32, #tpu.memory_space<vmem>>, vector<8x8xf32>
    %c0_12 = arith.constant 0 : index
    %c0_13 = arith.constant 0 : index
    %c0_14 = arith.constant 0 : index
    %28 = vector.load %arg3[%c0_12, %c0_13, %c0_14] : memref<1x8x1xf32, #tpu.memory_space<vmem>>, vector<1x8x1xf32>
    %29 = vector.shape_cast %28 : vector<1x8x1xf32> to vector<8x1xf32>
    %30 = vector.broadcast %29 : vector<8x1xf32> to vector<8x256xf32>
    %31 = arith.mulf %26, %30 : vector<8x256xf32>
    %cst_15 = arith.constant dense<0.000000e+00> : vector<8x256xf32>
    %32 = tpu.matmul %27, %31, %cst_15 {dimension_numbers = #tpu.dot_dimension_numbers<[1], [0], [0], [1], [0, 0, 1, 1], [], []>} : vector<8x8xf32>, vector<8x256xf32>, vector<8x256xf32> -> vector<8x256xf32>
    %c0_16 = arith.constant 0 : index
    %c0_17 = arith.constant 0 : index
    %33 = vector.load %arg7[%c0_16, %c0_17] : memref<8x8xf32, #tpu.memory_space<vmem>>, vector<8x8xf32>
    %c0_18 = arith.constant 0 : index
    %c0_19 = arith.constant 0 : index
    %c0_20 = arith.constant 0 : index
    %34 = vector.load %arg4[%c0_18, %c0_19, %c0_20] : memref<1x1x256xf32, #tpu.memory_space<vmem>>, vector<1x1x256xf32>
    %35 = vector.shape_cast %34 : vector<1x1x256xf32> to vector<1x256xf32>
    %36 = vector.broadcast %35 : vector<1x256xf32> to vector<8x256xf32>
    %37 = arith.mulf %26, %36 : vector<8x256xf32>
    %cst_21 = arith.constant dense<0.000000e+00> : vector<8x256xf32>
    %38 = tpu.matmul %33, %37, %cst_21 {dimension_numbers = #tpu.dot_dimension_numbers<[1], [0], [0], [1], [0, 0, 1, 1], [], []>} : vector<8x8xf32>, vector<8x256xf32>, vector<8x256xf32> -> vector<8x256xf32>
    %39 = arith.addf %32, %38 : vector<8x256xf32>
    %c0_22 = arith.constant 0 : index
    %c0_23 = arith.constant 0 : index
    %40 = vector.load %arg8[%c0_22, %c0_23] : memref<8x8xf32, #tpu.memory_space<vmem>>, vector<8x8xf32>
    %c0_24 = arith.constant 0 : index
    %c0_25 = arith.constant 0 : index
    %c0_26 = arith.constant 0 : index
    %41 = vector.load %arg5[%c0_24, %c0_25, %c0_26] : memref<1x1x256xf32, #tpu.memory_space<vmem>>, vector<1x1x256xf32>
    %42 = vector.shape_cast %41 : vector<1x1x256xf32> to vector<1x256xf32>
    %43 = vector.broadcast %42 : vector<1x256xf32> to vector<8x256xf32>
    %44 = arith.mulf %26, %43 : vector<8x256xf32>
    %cst_27 = arith.constant dense<0.000000e+00> : vector<8x256xf32>
    %45 = tpu.matmul %40, %44, %cst_27 {dimension_numbers = #tpu.dot_dimension_numbers<[1], [0], [0], [1], [0, 0, 1, 1], [], []>} : vector<8x8xf32>, vector<8x256xf32>, vector<8x256xf32> -> vector<8x256xf32>
    %46 = arith.addf %39, %45 : vector<8x256xf32>
    %c0_28 = arith.constant 0 : index
    %c0_29 = arith.constant 0 : index
    %47 = vector.load %arg9[%c0_28, %c0_29] : memref<8x1xf32, #tpu.memory_space<vmem>>, vector<8x1xf32>
    %48 = vector.broadcast %47 : vector<8x1xf32> to vector<8x256xf32>
    %49 = arith.addf %46, %48 : vector<8x256xf32>
    %50 = arith.addf %49, %1 : vector<8x256xf32>
    %c0_30 = arith.constant 0 : index
    %c0_31 = arith.constant 0 : index
    %c0_32 = arith.constant 0 : index
    %51 = vector.load %arg12[%c0_30, %c0_31, %c0_32] : memref<1x8x256xf32, #tpu.memory_space<vmem>>, vector<1x8x256xf32>
    %52 = vector.shape_cast %51 : vector<1x8x256xf32> to vector<8x256xf32>
    %53 = vector.shape_cast %50 : vector<8x256xf32> to vector<1x8x256xf32>
    tpu.vector_store %arg12[%c0_30, %c0_31, %c0_32], %53 {strides = array<i32>} : memref<1x8x256xf32, #tpu.memory_space<vmem>>, vector<1x8x256xf32>,
    return
  }
  func.func @transform_0(%arg0: i32, %arg1: i32) -> (i32, i32, i32) {
    %c0_i32 = arith.constant 0 : i32
    %c0_i32_0 = arith.constant 0 : i32
    return %arg0, %c0_i32, %arg1 : i32, i32, i32
  }
  func.func @transform_1(%arg0: i32, %arg1: i32) -> (i32, i32, i32) {
    %c0_i32 = arith.constant 0 : i32
    %c0_i32_0 = arith.constant 0 : i32
    %c0_i32_1 = arith.constant 0 : i32
    return %arg0, %c0_i32, %c0_i32_0 : i32, i32, i32
  }
  func.func @transform_2(%arg0: i32, %arg1: i32) -> (i32, i32, i32) {
    %c0_i32 = arith.constant 0 : i32
    %c0_i32_0 = arith.constant 0 : i32
    return %arg0, %c0_i32, %arg1 : i32, i32, i32
  }
  func.func @transform_3(%arg0: i32, %arg1: i32) -> (i32, i32, i32) {
    %c0_i32 = arith.constant 0 : i32
    %c0_i32_0 = arith.constant 0 : i32
    return %arg0, %c0_i32, %arg1 : i32, i32, i32
  }
  func.func @transform_4(%arg0: i32, %arg1: i32) -> (i32, i32) {
    %c0_i32 = arith.constant 0 : i32
    %c0_i32_0 = arith.constant 0 : i32
    %c0_i32_1 = arith.constant 0 : i32
    return %c0_i32, %c0_i32_0 : i32, i32
  }
  func.func @transform_5(%arg0: i32, %arg1: i32) -> (i32, i32) {
    %c0_i32 = arith.constant 0 : i32
    %c0_i32_0 = arith.constant 0 : i32
    %c0_i32_1 = arith.constant 0 : i32
    return %c0_i32, %c0_i32_0 : i32, i32
  }
  func.func @transform_6(%arg0: i32, %arg1: i32) -> (i32, i32) {
    %c0_i32 = arith.constant 0 : i32
    %c0_i32_0 = arith.constant 0 : i32
    %c0_i32_1 = arith.constant 0 : i32
    return %c0_i32, %c0_i32_0 : i32, i32
  }
  func.func @transform_7(%arg0: i32, %arg1: i32) -> (i32, i32) {
    %c0_i32 = arith.constant 0 : i32
    %c0_i32_0 = arith.constant 0 : i32
    %c0_i32_1 = arith.constant 0 : i32
    return %c0_i32, %c0_i32_0 : i32, i32
  }
  func.func @transform_8(%arg0: i32, %arg1: i32) -> (i32, i32) {
    %c0_i32 = arith.constant 0 : i32
    %c0_i32_0 = arith.constant 0 : i32
    %c0_i32_1 = arith.constant 0 : i32
    return %c0_i32, %c0_i32_0 : i32, i32
  }
  func.func @transform_9(%arg0: i32, %arg1: i32) -> (i32, i32) {
    %c0_i32 = arith.constant 0 : i32
    %c0_i32_0 = arith.constant 0 : i32
    %c0_i32_1 = arith.constant 0 : i32
    return %c0_i32, %c0_i32_0 : i32, i32
  }
  func.func @transform_10(%arg0: i32, %arg1: i32) -> (i32, i32, i32) {
    %c0_i32 = arith.constant 0 : i32
    %c0_i32_0 = arith.constant 0 : i32
    return %arg0, %c0_i32, %arg1 : i32, i32, i32
  }
}

module attributes {stable_mosaic.version = 11 : i64} {
  func.func @_ff_block_kernel(%arg0: i32, %arg1: i32, %arg2: memref<1x8x256xf32, #tpu.memory_space<vmem>>, %arg3: memref<32x8xf32, #tpu.memory_space<vmem>>, %arg4: memref<32x1xf32, #tpu.memory_space<vmem>>, %arg5: memref<8x32xf32, #tpu.memory_space<vmem>>, %arg6: memref<8x1xf32, #tpu.memory_space<vmem>>, %arg7: memref<8x1xf32, #tpu.memory_space<vmem>>, %arg8: memref<8x1xf32, #tpu.memory_space<vmem>>, %arg9: memref<1x8x256xf32, #tpu.memory_space<vmem>>) attributes {dimension_semantics = [#tpu.dimension_semantics<parallel>, #tpu.dimension_semantics<parallel>], iteration_bounds = array<i64: 2, 1>, scalar_prefetch = 0 : i64, scratch_operands = 0 : i64, tpu.core_type = #tpu.core_type<tc>, window_params = [{transform_indices = @transform_0, window_bounds = array<i64: 1, 8, 256>}, {pipeline_mode = #tpu.pipeline_mode<synchronous>, transform_indices = @transform_1, window_bounds = array<i64: 32, 8>}, {pipeline_mode = #tpu.pipeline_mode<synchronous>, transform_indices = @transform_2, window_bounds = array<i64: 32, 1>}, {pipeline_mode = #tpu.pipeline_mode<synchronous>, transform_indices = @transform_3, window_bounds = array<i64: 8, 32>}, {pipeline_mode = #tpu.pipeline_mode<synchronous>, transform_indices = @transform_4, window_bounds = array<i64: 8, 1>}, {pipeline_mode = #tpu.pipeline_mode<synchronous>, transform_indices = @transform_5, window_bounds = array<i64: 8, 1>}, {pipeline_mode = #tpu.pipeline_mode<synchronous>, transform_indices = @transform_6, window_bounds = array<i64: 8, 1>}, {transform_indices = @transform_7, window_bounds = array<i64: 1, 8, 256>}]} {
    %c0 = arith.constant 0 : index
    %c0_0 = arith.constant 0 : index
    %c0_1 = arith.constant 0 : index
    %0 = vector.load %arg2[%c0, %c0_0, %c0_1] : memref<1x8x256xf32, #tpu.memory_space<vmem>>, vector<1x8x256xf32>
    %1 = vector.shape_cast %0 : vector<1x8x256xf32> to vector<8x256xf32>
    %c0_2 = arith.constant 0 : index
    %c0_3 = arith.constant 0 : index
    %2 = vector.load %arg7[%c0_2, %c0_3] : memref<8x1xf32, #tpu.memory_space<vmem>>, vector<8x1xf32>
    %c0_4 = arith.constant 0 : index
    %c0_5 = arith.constant 0 : index
    %3 = vector.load %arg8[%c0_4, %c0_5] : memref<8x1xf32, #tpu.memory_space<vmem>>, vector<8x1xf32>
    %cst = arith.constant dense<0.000000e+00> : vector<256xf32>
    %4 = vector.multi_reduction <add>, %1, %cst [0] : vector<8x256xf32> to vector<256xf32>
    %5 = vector.shape_cast %4 : vector<256xf32> to vector<1x256xf32>
    %cst_6 = arith.constant 8.000000e+00 : f32
    %6 = vector.broadcast %cst_6 : f32 to vector<1x256xf32>
    %7 = arith.divf %5, %6 : vector<1x256xf32>
    %8 = vector.broadcast %7 : vector<1x256xf32> to vector<8x256xf32>
    %9 = arith.subf %1, %8 : vector<8x256xf32>
    %10 = arith.mulf %9, %9 : vector<8x256xf32>
    %cst_7 = arith.constant dense<0.000000e+00> : vector<256xf32>
    %11 = vector.multi_reduction <add>, %10, %cst_7 [0] : vector<8x256xf32> to vector<256xf32>
    %12 = vector.shape_cast %11 : vector<256xf32> to vector<1x256xf32>
    %cst_8 = arith.constant 8.000000e+00 : f32
    %13 = vector.broadcast %cst_8 : f32 to vector<1x256xf32>
    %14 = arith.divf %12, %13 : vector<1x256xf32>
    %15 = math.sqrt %14 : vector<1x256xf32>
    %cst_9 = arith.constant 9.99999974E-6 : f32
    %16 = vector.broadcast %cst_9 : f32 to vector<1x256xf32>
    %17 = arith.addf %15, %16 : vector<1x256xf32>
    %18 = tpu.reciprocal %17 {approx = true} : vector<1x256xf32> -> vector<1x256xf32>
    %19 = vector.broadcast %7 : vector<1x256xf32> to vector<8x256xf32>
    %20 = arith.subf %1, %19 : vector<8x256xf32>
    %21 = vector.broadcast %18 : vector<1x256xf32> to vector<8x256xf32>
    %22 = arith.mulf %20, %21 : vector<8x256xf32>
    %23 = vector.broadcast %2 : vector<8x1xf32> to vector<8x256xf32>
    %24 = arith.mulf %22, %23 : vector<8x256xf32>
    %25 = vector.broadcast %3 : vector<8x1xf32> to vector<8x256xf32>
    %26 = arith.addf %24, %25 : vector<8x256xf32>
    %c0_10 = arith.constant 0 : index
    %c0_11 = arith.constant 0 : index
    %27 = vector.load %arg3[%c0_10, %c0_11] : memref<32x8xf32, #tpu.memory_space<vmem>>, vector<32x8xf32>
    %cst_12 = arith.constant dense<0.000000e+00> : vector<32x256xf32>
    %28 = tpu.matmul %27, %26, %cst_12 {dimension_numbers = #tpu.dot_dimension_numbers<[1], [0], [0], [1], [0, 0, 1, 1], [], []>} : vector<32x8xf32>, vector<8x256xf32>, vector<32x256xf32> -> vector<32x256xf32>
    %c0_13 = arith.constant 0 : index
    %c0_14 = arith.constant 0 : index
    %29 = vector.load %arg4[%c0_13, %c0_14] : memref<32x1xf32, #tpu.memory_space<vmem>>, vector<32x1xf32>
    %30 = vector.broadcast %29 : vector<32x1xf32> to vector<32x256xf32>
    %31 = arith.addf %28, %30 : vector<32x256xf32>
    %cst_15 = arith.constant 5.000000e-01 : f32
    %32 = vector.broadcast %cst_15 : f32 to vector<32x256xf32>
    %33 = arith.mulf %32, %31 : vector<32x256xf32>
    %cst_16 = arith.constant 0.707106769 : f32
    %34 = vector.broadcast %cst_16 : f32 to vector<32x256xf32>
    %35 = arith.mulf %31, %34 : vector<32x256xf32>
    %36 = math.absf %35 : vector<32x256xf32>
    %cst_17 = arith.constant 0.327591091 : f32
    %37 = vector.broadcast %cst_17 : f32 to vector<32x256xf32>
    %38 = arith.mulf %37, %36 : vector<32x256xf32>
    %cst_18 = arith.constant 1.000000e+00 : f32
    %39 = vector.broadcast %cst_18 : f32 to vector<32x256xf32>
    %40 = arith.addf %39, %38 : vector<32x256xf32>
    %cst_19 = arith.constant 1.000000e+00 : f32
    %41 = vector.broadcast %cst_19 : f32 to vector<32x256xf32>
    %42 = arith.divf %41, %40 : vector<32x256xf32>
    %cst_20 = arith.constant 1.06140542 : f32
    %43 = vector.broadcast %cst_20 : f32 to vector<32x256xf32>
    %44 = arith.mulf %43, %42 : vector<32x256xf32>
    %cst_21 = arith.constant -1.45315206 : f32
    %45 = vector.broadcast %cst_21 : f32 to vector<32x256xf32>
    %46 = arith.addf %44, %45 : vector<32x256xf32>
    %47 = arith.mulf %46, %42 : vector<32x256xf32>
    %cst_22 = arith.constant 1.42141378 : f32
    %48 = vector.broadcast %cst_22 : f32 to vector<32x256xf32>
    %49 = arith.addf %47, %48 : vector<32x256xf32>
    %50 = arith.mulf %49, %42 : vector<32x256xf32>
    %cst_23 = arith.constant -0.284496725 : f32
    %51 = vector.broadcast %cst_23 : f32 to vector<32x256xf32>
    %52 = arith.addf %50, %51 : vector<32x256xf32>
    %53 = arith.mulf %52, %42 : vector<32x256xf32>
    %cst_24 = arith.constant 0.254829586 : f32
    %54 = vector.broadcast %cst_24 : f32 to vector<32x256xf32>
    %55 = arith.addf %53, %54 : vector<32x256xf32>
    %56 = arith.mulf %55, %42 : vector<32x256xf32>
    %cst_25 = arith.constant 0.000000e+00 : f32
    %57 = vector.broadcast %cst_25 : f32 to vector<32x256xf32>
    %58 = arith.subf %57, %36 : vector<32x256xf32>
    %59 = arith.mulf %58, %36 : vector<32x256xf32>
    %60 = math.exp %59 : vector<32x256xf32>
    %61 = arith.mulf %56, %60 : vector<32x256xf32>
    %cst_26 = arith.constant 1.000000e+00 : f32
    %62 = vector.broadcast %cst_26 : f32 to vector<32x256xf32>
    %63 = arith.subf %62, %61 : vector<32x256xf32>
    %cst_27 = arith.constant 0.000000e+00 : f32
    %64 = vector.broadcast %cst_27 : f32 to vector<32x256xf32>
    %65 = arith.cmpf olt, %35, %64 : vector<32x256xf32>
    %cst_28 = arith.constant 0.000000e+00 : f32
    %66 = vector.broadcast %cst_28 : f32 to vector<32x256xf32>
    %67 = arith.subf %66, %63 : vector<32x256xf32>
    %68 = arith.select %65, %67, %63 : vector<32x256xi1>, vector<32x256xf32>
    %cst_29 = arith.constant 1.000000e+00 : f32
    %69 = vector.broadcast %cst_29 : f32 to vector<32x256xf32>
    %70 = arith.addf %69, %68 : vector<32x256xf32>
    %71 = arith.mulf %33, %70 : vector<32x256xf32>
    %c0_30 = arith.constant 0 : index
    %c0_31 = arith.constant 0 : index
    %72 = vector.load %arg5[%c0_30, %c0_31] : memref<8x32xf32, #tpu.memory_space<vmem>>, vector<8x32xf32>
    %cst_32 = arith.constant dense<0.000000e+00> : vector<8x256xf32>
    %73 = tpu.matmul %72, %71, %cst_32 {dimension_numbers = #tpu.dot_dimension_numbers<[1], [0], [0], [1], [0, 0, 1, 1], [], []>} : vector<8x32xf32>, vector<32x256xf32>, vector<8x256xf32> -> vector<8x256xf32>
    %c0_33 = arith.constant 0 : index
    %c0_34 = arith.constant 0 : index
    %74 = vector.load %arg6[%c0_33, %c0_34] : memref<8x1xf32, #tpu.memory_space<vmem>>, vector<8x1xf32>
    %75 = vector.broadcast %74 : vector<8x1xf32> to vector<8x256xf32>
    %76 = arith.addf %73, %75 : vector<8x256xf32>
    %77 = arith.addf %76, %1 : vector<8x256xf32>
    %c0_35 = arith.constant 0 : index
    %c0_36 = arith.constant 0 : index
    %c0_37 = arith.constant 0 : index
    %78 = vector.load %arg9[%c0_35, %c0_36, %c0_37] : memref<1x8x256xf32, #tpu.memory_space<vmem>>, vector<1x8x256xf32>
    %79 = vector.shape_cast %78 : vector<1x8x256xf32> to vector<8x256xf32>
    %80 = vector.shape_cast %77 : vector<8x256xf32> to vector<1x8x256xf32>
    tpu.vector_store %arg9[%c0_35, %c0_36, %c0_37], %80 {strides = array<i32>} : memref<1x8x256xf32, #tpu.memory_space<vmem>>, vector<1x8x256xf32>,
    return
  }
  func.func @transform_0(%arg0: i32, %arg1: i32) -> (i32, i32, i32) {
    %c0_i32 = arith.constant 0 : i32
    %c0_i32_0 = arith.constant 0 : i32
    return %arg0, %c0_i32, %arg1 : i32, i32, i32
  }
  func.func @transform_1(%arg0: i32, %arg1: i32) -> (i32, i32) {
    %c0_i32 = arith.constant 0 : i32
    %c0_i32_0 = arith.constant 0 : i32
    %c0_i32_1 = arith.constant 0 : i32
    return %c0_i32, %c0_i32_0 : i32, i32
  }
  func.func @transform_2(%arg0: i32, %arg1: i32) -> (i32, i32) {
    %c0_i32 = arith.constant 0 : i32
    %c0_i32_0 = arith.constant 0 : i32
    %c0_i32_1 = arith.constant 0 : i32
    return %c0_i32, %c0_i32_0 : i32, i32
  }
  func.func @transform_3(%arg0: i32, %arg1: i32) -> (i32, i32) {
    %c0_i32 = arith.constant 0 : i32
    %c0_i32_0 = arith.constant 0 : i32
    %c0_i32_1 = arith.constant 0 : i32
    return %c0_i32, %c0_i32_0 : i32, i32
  }
  func.func @transform_4(%arg0: i32, %arg1: i32) -> (i32, i32) {
    %c0_i32 = arith.constant 0 : i32
    %c0_i32_0 = arith.constant 0 : i32
    %c0_i32_1 = arith.constant 0 : i32
    return %c0_i32, %c0_i32_0 : i32, i32
  }
  func.func @transform_5(%arg0: i32, %arg1: i32) -> (i32, i32) {
    %c0_i32 = arith.constant 0 : i32
    %c0_i32_0 = arith.constant 0 : i32
    %c0_i32_1 = arith.constant 0 : i32
    return %c0_i32, %c0_i32_0 : i32, i32
  }
  func.func @transform_6(%arg0: i32, %arg1: i32) -> (i32, i32) {
    %c0_i32 = arith.constant 0 : i32
    %c0_i32_0 = arith.constant 0 : i32
    %c0_i32_1 = arith.constant 0 : i32
    return %c0_i32, %c0_i32_0 : i32, i32
  }
  func.func @transform_7(%arg0: i32, %arg1: i32) -> (i32, i32, i32) {
    %c0_i32 = arith.constant 0 : i32
    %c0_i32_0 = arith.constant 0 : i32
    return %arg0, %c0_i32, %arg1 : i32, i32, i32
  }
}

</mosaic_0001>

<bundles_post_ra>
// kernel: preconv_forward_pallas.5
= control target key start
LH: loop header
LB: loop body
LE: loop exit
PB: predicated region body
PF: predicated region fallthrough
CT: control target
= control target key end

     0   :  { %s462_s12 = smov 0   ;;  %s464_s13 = smov 0   ;;  %s508_s0 = inlined_call_operand.vmem [shape: f32[2,8,256], index: 0, kind: input, shape index: {}]   ;;  %s509_s1 = inlined_call_operand.vmem [shape: f32[8,1], index: 1, kind: input, shape index: {}]   ;;  %s510_s2 = inlined_call_operand.vmem [shape: f32[8,1], index: 2, kind: input, shape index: {}]   ;;  %s511_s3 = inlined_call_operand.vmem [shape: f32[2,8,256], index: 3, kind: output, shape index: {}]  }
   0x1   :  { %s466_s14 = smov 0  }
   0x2 LB: > { %s25_s15 = sadd.s32 1, %s435_s13  ;;  %p374_p0 = scmp.ge.s32.totalorder %s439_s14, 1  ;;  %s439_s14 = sphi %s466_s14, %s13_s14   ;;  %s435_s13 = sphi %s464_s13, %s513_s13   ;;  %s431_s12 = sphi %s462_s12, %s512_s12  }
   0x3   : > { %p27_p1 = scmp.ge.s32.totalorder %s25_s15, 2  ;;  %p158_p2 = scmp.lt.s32.totalorder %s439_s14, 3 }
   0x5   : > { %s515_s15 = smov (%p27_p1, %s25_s15), 0  ;;  %p159_p3 = pnand %p374_p0, %p158_p2 }
   0x6   : > { %v212_v0 = vld [vmem:[%s509_s1] sm:$0xff] (!%p159_p3)  ;;  %v441_v1 = vmov (!%p159_p3), 0   ;;  %p191_p4 = scmp.lt.s32.totalorder (!%p159_p3), %s431_s12, 1 }
   0x7   : > { %162 = sbr.rel (%p159_p3) target bundleno = 143 (0x8f), region = 32  ;;  %408 = vset.pattern.permute.xlu0 (!%p159_p3), %v441_v1  ;;  %v213_v2 = vld [vmem:[%s510_s2] sm:$0xff] (!%p159_p3) }
   0x8   : > { %269 = vperm.xlu0 (!%p159_p3), %408, %v212_v0  }
   0xc   : > { %276 = vperm.xlu0 (!%p159_p3), %408, %v213_v2  }
   0xe   : > { %s517_s12 = smov (!%p191_p4, %s431_s12), 1 }
   0xf   : > { %s381_s20 = sshll.u32 %s517_s12, 4 }
  0x10   : > { %s198_s23 = scalar_lea.vmem %s508_s0, %s381_s20  ;;  %s208_s26 = scalar_lea.vmem %s511_s3, %s381_s20 }
  0x11   : > { %v210_v3 = vld [vmem:[%s198_s23] sm:$0xff]  ;;  %v211_v4 = vld [vmem:[%s198_s23 + $0x8] sm:$0xff] }
  0x12   : > { %v214_v5 = vrot.slane %v210_v3, 4  ;;  %v220_v6 = vrot.slane %v211_v4, 4 }
  0x14   : > { %v215_v7 = vadd.f32 %v214_v5, %v210_v3  ;;  %v221_v8 = vadd.f32 %v220_v6, %v211_v4 }
  0x16   : > { %v216_v9 = vrot.slane %v215_v7, 2  ;;  %v222_v10 = vrot.slane %v221_v8, 2 }
  0x18   : > { %v217_v11 = vadd.f32 %v216_v9, %v215_v7  ;;  %v223_v12 = vadd.f32 %v222_v10, %v221_v8 }
  0x1a   : > { %v218_v13 = vrot.slane %v217_v11, 1  ;;  %v224_v14 = vrot.slane %v223_v12, 1 }
  0x1c   : > { %v219_v15 = vadd.f32 %v218_v13, %v217_v11  ;;  %v225_v16 = vadd.f32 %v224_v14, %v223_v12 }
  0x1e   : > { %v227_v17 = vmul.f32 0.125, %v219_v15  ;;  %v228_v18 = vmul.f32 0.125, %v225_v16 }
  0x20   : > { %v229_v19 = vsub.f32 %v210_v3, %v227_v17  ;;  %v230_v20 = vsub.f32 %v211_v4, %v228_v18 }
  0x22   : > { %v231_v21 = vmul.f32 %v229_v19, %v229_v19  ;;  %v232_v22 = vmul.f32 %v230_v20, %v230_v20 }
  0x24   : > { %v233_v23 = vrot.slane %v231_v21, 4  ;;  %v239_v24 = vrot.slane %v232_v22, 4 }
  0x26   : > { %v234_v25 = vadd.f32 %v233_v23, %v231_v21  ;;  %v240_v26 = vadd.f32 %v239_v24, %v232_v22 }
  0x28   : > { %v235_v27 = vrot.slane %v234_v25, 2  ;;  %v241_v28 = vrot.slane %v240_v26, 2 }
  0x2a   : > { %v236_v29 = vadd.f32 %v235_v27, %v234_v25  ;;  %v242_v30 = vadd.f32 %v241_v28, %v240_v26 }
  0x2c   : > { %v237_v31 = vrot.slane %v236_v29, 1  ;;  %v243_v32 = vrot.slane %v242_v30, 1 }
  0x2e   : > { %v238_v33 = vadd.f32 %v237_v31, %v236_v29  ;;  %v244_v34 = vadd.f32 %v243_v32, %v242_v30 }
  0x30   : > { %v245_v35 = vmul.f32 0.125, %v238_v33  ;;  %v246_v36 = vmul.f32 0.125, %v244_v34 }
  0x32   : > { %409 = vrsqrt.f32 %v245_v35  ;;  %vm249_vm0 = vcmp.eq.f32.partialorder %v245_v35, inf  ;;  %vm256_vm1 = vcmp.eq.f32.partialorder %v246_v36, inf  ;;  %v252_v41 = vand.u32 2147483648, %v245_v35 }
  0x33   : > { %411 = vrsqrt.f32 %v246_v36  ;;  %vm251_vm2 = vcmp.eq.f32.partialorder %v245_v35, 0.0  ;;  %v259_v43 = vand.u32 2147483648, %v246_v36  ;;  %vm258_vm3 = vcmp.eq.f32.partialorder %v246_v36, 0.0 }
  0x3c   : > { %v410_v37 = vpop.eup %409 }
  0x3d   : > { %v412_v38 = vpop.eup %411  ;;  %v248_v39 = vmul.f32 %v410_v37, %v245_v35 }
  0x3e   : > { %v255_v40 = vmul.f32 %v412_v38, %v246_v36 }
  0x3f   : > { %v250_v42 = vsel %vm249_vm0, %v245_v35, %v248_v39 }
  0x40   : > { %v257_v44 = vsel %vm256_vm1, %v246_v36, %v255_v40  ;;  %v253_v45 = vsel %vm251_vm2, %v252_v41, %v250_v42 }
  0x41   : > { %v260_v46 = vsel %vm258_vm3, %v259_v43, %v257_v44  ;;  %v261_v47 = vadd.f32 1e-05, %v253_v45 }
  0x42   : > { %v262_v48 = vadd.f32 1e-05, %v260_v46 }
  0x43   : > { %413 = vrcp.f32 %v261_v47 }
  0x44   : > { %415 = vrcp.f32 %v262_v48 }
  0x4d   : > { %v414_v49 = vpop.eup %413 }
  0x4e   : > { %v416_v50 = vpop.eup %415  ;;  %v265_v51 = vmul.f32 %v414_v49, %v229_v19 }
  0x4f   : > { %v266_v52 = vmul.f32 %v416_v50, %v230_v20 }
  0x87   : > { %v270_v53 = vpop.permute.xlu0 %269 }
  0x88   : > { %v272_v54 = vmul.f32 %v270_v53, %v265_v51  ;;  %v273_v55 = vmul.f32 %v270_v53, %v266_v52 }
  0x8b   : > { %v277_v56 = vpop.permute.xlu0 %276 }
  0x8c   : > { %v279_v57 = vadd.f32 %v277_v56, %v272_v54  ;;  %v280_v58 = vadd.f32 %v277_v56, %v273_v55 }
  0x8e   : > { %281 = vst [vmem:[%s208_s26] sm:$0xff] %v279_v57  ;;  %282 = vst [vmem:[%s208_s26 + $0x8] sm:$0xff] %v280_v58 }
  0x8f PF: > { %s13_s14 = sadd.s32 1, %s439_s14   ;;  %s512_s12 = smov %s435_s13 }
  0x90   : > { %p10_p5 = scmp.ge.s32.totalorder %s13_s14, 4   ;;  %s513_s13 = smov %s515_s15 }
  0x92   :  { %12 = sbr.rel (!%p10_p5) target bundleno = 2 (0x2), region = 62 }

// kernel: preconv_forward_pallas.6
= control target key start
LH: loop header
LB: loop body
LE: loop exit
PB: predicated region body
PF: predicated region fallthrough
CT: control target
= control target key end

     0   :  { %s1098_s13 = smov 0   ;;  %s1100_s14 = smov 0   ;;  %s1182_s0 = inlined_call_operand.vmem [shape: f32[2,8,256], index: 0, kind: input, shape index: {}]   ;;  %s1183_s1 = inlined_call_operand.vmem [shape: f32[2,8,1], index: 1, kind: input, shape index: {}]   ;;  %s1184_s2 = inlined_call_operand.vmem [shape: f32[2,1,256], index: 2, kind: input, shape index: {}]   ;;  %s1185_s3 = inlined_call_operand.vmem [shape: f32[2,1,256], index: 3, kind: input, shape index: {}]   ;;  %s1186_s4 = inlined_call_operand.vmem [shape: f32[8,8], index: 4, kind: input, shape index: {}]   ;;  %s1187_s5 = inlined_call_operand.vmem [shape: f32[8,8], index: 5, kind: input, shape index: {}]   ;;  %s1188_s6 = inlined_call_operand.vmem [shape: f32[8,8], index: 6, kind: input, shape index: {}]   ;;  %s1189_s7 = inlined_call_operand.vmem [shape: f32[8,1], index: 7, kind: input, shape index: {}]   ;;  %s1190_s8 = inlined_call_operand.vmem [shape: f32[8,1], index: 8, kind: input, shape index: {}]   ;;  %s1191_s9 = inlined_call_operand.vmem [shape: f32[8,1], index: 9, kind: input, shape index: {}]   ;;  %s1192_s10 = inlined_call_operand.vmem [shape: f32[2,8,256], index: 10, kind: output, shape index: {}]  }
   0x1   :  { %s1102_s15 = smov 0  }
   0x2 LB: > { %s32_s16 = sadd.s32 1, %s1035_s14  ;;  %p962_p0 = scmp.ge.s32.totalorder %s1039_s15, 1  ;;  %s1039_s15 = sphi %s1102_s15, %s20_s15   ;;  %s1035_s14 = sphi %s1100_s14, %s1194_s14   ;;  %s1031_s13 = sphi %s1098_s13, %s1193_s13  }
   0x3   : > { %p34_p1 = scmp.ge.s32.totalorder %s32_s16, 2  ;;  %p374_p2 = scmp.lt.s32.totalorder %s1039_s15, 3 }
   0x5   : > { %s1196_s16 = smov (%p34_p1, %s32_s16), 0  ;;  %p375_p3 = pnand %p962_p0, %p374_p2 }
   0x6   : > { %v484_v0 = vld [vmem:[%s1190_s8] sm:$0xff] (!%p375_p3)  ;;  %p441_p4 = scmp.lt.s32.totalorder (!%p375_p3), %s1031_s13, 1  ;;  %v1041_v1 = vmov (!%p375_p3), 0   ;;  %v1042_v5 = vmov (!%p375_p3), 0.0   ;;  %v565_v52 = vlaneseq (!%p375_p3)  ;;  %vm577_vm4 = vcmask (!%p375_p3), 64512  }
   0x7   : > { %378 = sbr.rel (%p375_p3) target bundleno = 378 (0x17a), region = 60  ;;  %1007 = vset.pattern.permute.xlu0 (!%p375_p3), %v1041_v1  ;;  %1008 = vset.pattern.permute.xlu1 (!%p375_p3), %v1041_v1  ;;  %v485_v2 = vld [vmem:[%s1191_s9] sm:$0xff] (!%p375_p3) }
   0x8   : > { %541 = vperm.xlu0 (!%p375_p3), %1007, %v484_v0   ;;  %v817_v4 = vld [vmem:[%s1189_s7] sm:$0xff] (!%p375_p3)  ;;  %719 = vmatprep.mubr.f32.mxu0 (!%p375_p3), %v1042_v5  ;;  %v566_v54 = vshrl.u32 (!%p375_p3), %v565_v52, 7 }
   0x9   : > { %645 = vmatprep.mubr.f32.mxu1 (!%p375_p3), %v1042_v5 }
   0xa   : > { %v571_v58 = vsub.s32 (!%p375_p3), 1, %v566_v54  ;;  %v567_v59 = vsub.s32 (!%p375_p3), 0, %v566_v54 }
   0xc   : > { %548 = vperm.xlu0 (!%p375_p3), %1007, %v485_v2  }
   0xe   : > { %s1198_s13 = smov (!%p441_p4, %s1031_s13), 1 }
   0xf   : > { %s965_s21 = sshll.u32 %s1198_s13, 3  ;;  %s975_s27 = sshll.u32 %s1198_s13, 4 }
  0x10   : > { %s453_s24 = scalar_lea.vmem %s1183_s1, %s965_s21  ;;  %s448_s30 = scalar_lea.vmem %s1182_s0, %s975_s27 }
  0x11   : > { %v554_v3 = vld [vmem:[%s453_s24] sm:$0xff]  ;;  %v1141_v7 = vld [vmem:[%s448_s30 + $0x8] sm:$0xff]  ;;  %s966_s11 = sshll.u32 %s1198_s13, 1 }
  0x12   : > { %557 = vperm.xlu1 %1008, %v554_v3   ;;  %v1139_v6 = vld [vmem:[%s448_s30] sm:$0xff]  ;;  %v492_v9 = vrot.slane %v1141_v7, 4  ;;  %s461_s18 = scalar_lea.vmem %s1184_s2, %s966_s11  ;;  %s470_s21 = scalar_lea.vmem %s1185_s3, %s966_s11 }
  0x13   : > { %v486_v8 = vrot.slane %v1139_v6, 4  ;;  %v563_v61 = vld [vmem:[%s461_s18] sm:$0x3]  ;;  %s480_s11 = scalar_lea.vmem %s1192_s10, %s975_s27 }
  0x14   : > { %v493_v11 = vadd.f32 %v492_v9, %v1141_v7  ;;  %v727_v62 = vld [vmem:[%s470_s21] sm:$0x3]  ;;  %v572_v1 = vrot.slane %v563_v61, %v571_v58  ;;  %v568_v2 = vrot.slane %v563_v61, %v567_v59 }
  0x15   : > { %v487_v10 = vadd.f32 %v486_v8, %v1139_v6 }
  0x16   : > { %820 = vperm.xlu1 %1008, %v817_v4   ;;  %v494_v13 = vrot.slane %v493_v11, 2 }
  0x17   : > { %v488_v12 = vrot.slane %v487_v10, 2 }
  0x18   : > { %v495_v15 = vadd.f32 %v494_v13, %v493_v11  ;;  %v732_v11 = vrot.slane %v727_v62, %v567_v59 }
  0x19   : > { %v489_v14 = vadd.f32 %v488_v12, %v487_v10  ;;  %v736_v10 = vrot.slane %v727_v62, %v571_v58 }
  0x1a   : > { %v496_v17 = vrot.slane %v495_v15, 1 }
  0x1b   : > { %v490_v16 = vrot.slane %v489_v14, 1 }
  0x1c   : > { %v497_v19 = vadd.f32 %v496_v17, %v495_v15 }
  0x1d   : > { %v491_v18 = vadd.f32 %v490_v16, %v489_v14  ;;  %v553_v16 = vld [vmem:[%s1186_s4] sm:$0xff] }
  0x1e   : > { %v500_v21 = vmul.f32 0.125, %v497_v19  ;;  %v562_v19 = vld [vmem:[%s1187_s5] sm:$0xff] }
  0x1f   : > { %v499_v20 = vmul.f32 0.125, %v491_v18 }
  0x20   : > { %v502_v23 = vsub.f32 %v1141_v7, %v500_v21 }
  0x21   : > { %v501_v22 = vsub.f32 %v1139_v6, %v499_v20  ;;  %v726_v20 = vld [vmem:[%s1188_s6] sm:$0xff] }
  0x22   : > { %v504_v25 = vmul.f32 %v502_v23, %v502_v23 }
  0x23   : > { %v503_v24 = vmul.f32 %v501_v22, %v501_v22 }
  0x24   : > { %v511_v27 = vrot.slane %v504_v25, 4 }
  0x25   : > { %v505_v26 = vrot.slane %v503_v24, 4 }
  0x26   : > { %v512_v29 = vadd.f32 %v511_v27, %v504_v25 }
  0x27   : > { %v506_v28 = vadd.f32 %v505_v26, %v503_v24 }
  0x28   : > { %v513_v31 = vrot.slane %v512_v29, 2 }
  0x29   : > { %v507_v30 = vrot.slane %v506_v28, 2 }
  0x2a   : > { %v514_v33 = vadd.f32 %v513_v31, %v512_v29 }
  0x2b   : > { %v508_v32 = vadd.f32 %v507_v30, %v506_v28 }
  0x2c   : > { %v515_v35 = vrot.slane %v514_v33, 1 }
  0x2d   : > { %v509_v34 = vrot.slane %v508_v32, 1 }
  0x2e   : > { %v516_v37 = vadd.f32 %v515_v35, %v514_v33 }
  0x2f   : > { %v510_v36 = vadd.f32 %v509_v34, %v508_v32 }
  0x30   : > { %v518_v39 = vmul.f32 0.125, %v516_v37 }
  0x31   : > { %v517_v38 = vmul.f32 0.125, %v510_v36 }
  0x32   : > { %vm528_vm1 = vcmp.eq.f32.partialorder %v518_v39, inf  ;;  %v531_v46 = vand.u32 2147483648, %v518_v39  ;;  %vm530_vm3 = vcmp.eq.f32.partialorder %v518_v39, 0.0 }
  0x33   : > { %1009 = vrsqrt.f32 %v517_v38  ;;  %vm521_vm0 = vcmp.eq.f32.partialorder %v517_v38, inf  ;;  %v524_v44 = vand.u32 2147483648, %v517_v38  ;;  %vm523_vm2 = vcmp.eq.f32.partialorder %v517_v38, 0.0 }
  0x34   : > { %1011 = vrsqrt.f32 %v518_v39 }
  0x3d   : > { %v1010_v40 = vpop.eup %1009 }
  0x3e   : > { %v1012_v41 = vpop.eup %1011  ;;  %v520_v42 = vmul.f32 %v1010_v40, %v517_v38 }
  0x3f   : > { %v527_v43 = vmul.f32 %v1012_v41, %v518_v39 }
  0x40   : > { %v522_v45 = vsel %vm521_vm0, %v517_v38, %v520_v42 }
  0x41   : > { %v529_v47 = vsel %vm528_vm1, %v518_v39, %v527_v43  ;;  %v525_v48 = vsel %vm523_vm2, %v524_v44, %v522_v45 }
  0x42   : > { %v532_v49 = vsel %vm530_vm3, %v531_v46, %v529_v47  ;;  %v533_v50 = vadd.f32 1e-05, %v525_v48 }
  0x43   : > { %v534_v51 = vadd.f32 1e-05, %v532_v49 }
  0x44   : > { %1013 = vrcp.f32 %v533_v50 }
  0x45   : > { %1015 = vrcp.f32 %v534_v51 }
  0x4e   : > { %v1014_v53 = vpop.eup %1013 }
  0x4f   : > { %v1016_v55 = vpop.eup %1015  ;;  %v537_v56 = vmul.f32 %v1014_v53, %v501_v22 }
  0x50   : > { %v538_v57 = vmul.f32 %v1016_v55, %v502_v23 }
  0x87   : > { %v542_v60 = vpop.permute.xlu0 %541 }
  0x88   : > { %v544_v63 = vmul.f32 %v542_v60, %v537_v56  ;;  %v545_v0 = vmul.f32 %v542_v60, %v538_v57 }
  0x8b   : > { %v549_v3 = vpop.permute.xlu0 %548 }
  0x8c   : > { %v551_v4 = vadd.f32 %v549_v3, %v544_v63  ;;  %v552_v8 = vadd.f32 %v549_v3, %v545_v0 }
  0x8e   : > { %v576_v12 = vmul.f32 %v572_v1, %v552_v8  ;;  %v575_v14 = vmul.f32 %v568_v2, %v551_v4  ;;  %v740_v17 = vmul.f32 %v736_v10, %v552_v8  ;;  %v739_v18 = vmul.f32 %v732_v11, %v551_v4 }
  0x90   : > { %581 = vmatprep.subr.mxu1 %v576_v12 }
  0x91   : > { %v558_v9 = vpop.permute.xlu1 %557  ;;  %582 = vmatpush1.msra.mxu1 %v575_v14 }
  0x92   : > { %v561_v13 = vmul.f32 %v558_v9, %v552_v8  ;;  %v560_v15 = vmul.f32 %v558_v9, %v551_v4  ;;  %970 = vmatmul.mubr.msk.f32.vlgmr.msra.gmra.mrb[0].mxu1 %vm577_vm4, %v562_v19 }
  0x94   : > { %655 = vmatprep.subr.mxu0 %v561_v13 }
  0x95   : > { %656 = vmatpush1.msra.mxu0 %v560_v15  ;;  %v821_v26 = vpop.permute.xlu1 %820 }
  0x96   : > { %971 = vmatmul.mubr.msk.f32.vlgmr.msra.gmra.mrb[0].mxu0 %vm577_vm4, %v553_v16  ;;  %744 = vmatprep.subr.mxu0 %v740_v17 }
  0x97   : > { %745 = vmatpush1.msra.mxu0 %v739_v18  ;;  %808 = vmatprep.mubr.f32.mxu0 %v1042_v5 }
  0x9e   : > { %972 = vmatmul.mubr.msk.f32.vlgmr.msra.gmra.mrb[0].mxu0 %vm577_vm4, %v726_v20 }
 0x165   : > { %v647_v21 = vpop.f32.mrb[0].mxu1 }
 0x166   : > { %v649_v22 = vpop.f32.mrb[1].mxu1 }
 0x171   : > { %v810_v23 = vpop.f32.mrb[0].mxu0 }
 0x172   : > { %v977_v24 = vadd.f32 %v810_v23, %v647_v21  ;;  %v812_v25 = vpop.f32.mrb[1].mxu0 }
 0x173   : > { %v978_v27 = vadd.f32 %v812_v25, %v649_v22 }
 0x174   : > { %v823_v28 = vadd.f32 %v977_v24, %v821_v26 }
 0x175   : > { %v824_v5 = vadd.f32 %v978_v27, %v821_v26 }
 0x176   : > { %v825_v29 = vadd.f32 %v823_v28, %v1139_v6 }
 0x177   : > { %v826_v30 = vadd.f32 %v824_v5, %v1141_v7 }
 0x178   : > { %827 = vst [vmem:[%s480_s11] sm:$0xff] %v825_v29 }
 0x179   : > { %828 = vst [vmem:[%s480_s11 + $0x8] sm:$0xff] %v826_v30 }
 0x17a PF: > { %s20_s15 = sadd.s32 1, %s1039_s15   ;;  %s1193_s13 = smov %s1035_s14 }
 0x17b   : > { %p17_p5 = scmp.ge.s32.totalorder %s20_s15, 4   ;;  %s1194_s14 = smov %s1196_s16 }
 0x17d   :  { %19 = sbr.rel (!%p17_p5) target bundleno = 2 (0x2), region = 99 }

// kernel: preconv_forward_pallas.7
= control target key start
LH: loop header
LB: loop body
LE: loop exit
PB: predicated region body
PF: predicated region fallthrough
CT: control target
= control target key end

     0   :  { %s1068_s24 = smov 0   ;;  %s1070_s25 = smov 0   ;;  %s1285_s0 = inlined_call_operand.vmem [shape: f32[2,8,256], index: 0, kind: input, shape index: {}]   ;;  %s1286_s1 = inlined_call_operand.vmem [shape: f32[32,8], index: 1, kind: input, shape index: {}]   ;;  %s1287_s2 = inlined_call_operand.vmem [shape: f32[32,1], index: 2, kind: input, shape index: {}]   ;;  %s1288_s3 = inlined_call_operand.vmem [shape: f32[8,32], index: 3, kind: input, shape index: {}]   ;;  %s1289_s4 = inlined_call_operand.vmem [shape: f32[8,1], index: 4, kind: input, shape index: {}]   ;;  %s1290_s5 = inlined_call_operand.vmem [shape: f32[8,1], index: 5, kind: input, shape index: {}]   ;;  %s1291_s6 = inlined_call_operand.vmem [shape: f32[8,1], index: 6, kind: input, shape index: {}]   ;;  %s1292_s7 = inlined_call_operand.vmem [shape: f32[2,8,256], index: 7, kind: output, shape index: {}]  }
   0x1   :  { %s1072_s26 = smov 0  }
   0x2 LB: > { %s29_s27 = sadd.s32 1, %s1020_s25  ;;  %p912_p0 = scmp.ge.s32.totalorder %s1024_s26, 1  ;;  %s1024_s26 = sphi %s1072_s26, %s17_s26   ;;  %s1020_s25 = sphi %s1070_s25, %s1294_s25   ;;  %s1016_s24 = sphi %s1068_s24, %s1293_s24  }
   0x3   : > { %p31_p1 = scmp.ge.s32.totalorder %s29_s27, 2  ;;  %p258_p2 = scmp.lt.s32.totalorder %s1024_s26, 3 }
   0x5   : > { %s1296_s27 = smov (%p31_p1, %s29_s27), 0  ;;  %p259_p3 = pnand %p912_p0, %p258_p2 }
   0x6   : > { %v320_v0 = vld [vmem:[%s1290_s5] sm:$0xff] (!%p259_p3)  ;;  %v1026_v1 = vmov (!%p259_p3), 0   ;;  %p299_p4 = scmp.lt.s32.totalorder (!%p259_p3), %s1016_s24, 1  ;;  %v395_v3 = vld [vmem:[%s1287_s2 + $0x10] sm:$0xff] (!%p259_p3)  ;;  %v1027_v4 = vmov (!%p259_p3), 0.0   ;;  %v394_v11 = vld [vmem:[%s1287_s2 + $0x8] sm:$0xff] (!%p259_p3) }
   0x7   : > { %262 = sbr.rel (%p259_p3) target bundleno = 644 (0x284), region = 48  ;;  %960 = vset.pattern.permute.xlu0 (!%p259_p3), %v1026_v1  ;;  %961 = vset.pattern.permute.xlu1 (!%p259_p3), %v1026_v1  ;;  %v321_v2 = vld [vmem:[%s1291_s6] sm:$0xff] (!%p259_p3)  ;;  %v396_v14 = vld [vmem:[%s1287_s2 + $0x18] sm:$0xff] (!%p259_p3)  ;;  %vm417_vm4 = vcmask (!%p259_p3), 64512   ;;  %vm742_vm13 = vcmask (!%p259_p3), 261120  }
   0x8   : > { %377 = vperm.xlu0 (!%p259_p3), %960, %v320_v0   ;;  %494 = vmatprep.mubr.f32.mxu0 (!%p259_p3), %v1027_v4  ;;  %v736_v5 = vld [vmem:[%s1289_s4] sm:$0xff] (!%p259_p3) }
   0x9   : > { %810 = vmatprep.mubr.f32.mxu1 (!%p259_p3), %v1027_v4  ;;  %v393_v8 = vld [vmem:[%s1287_s2] sm:$0xff] (!%p259_p3) }
   0xa   : > { %399 = vperm.xlu1 (!%p259_p3), %961, %v393_v8   ;;  %v389_v1 = vld [vmem:[%s1286_s1] sm:$0xff] (!%p259_p3) }
   0xc   : > { %384 = vperm.xlu0 (!%p259_p3), %960, %v321_v2   ;;  %v390_v2 = vld [vmem:[%s1286_s1 + $0x8] sm:$0xff] (!%p259_p3) }
   0xe   : > { %s1298_s24 = smov (!%p299_p4, %s1016_s24), 1  ;;  %404 = vperm.xlu1 %961, %v394_v11  }
   0xf   : > { %s924_s13 = sshll.u32 %s1298_s24, 4 }
  0x10   : > { %409 = vperm.xlu0 %960, %v395_v3   ;;  %s306_s16 = scalar_lea.vmem %s1285_s0, %s924_s13  ;;  %v391_v3 = vld [vmem:[%s1286_s1 + $0x10] sm:$0xff]  ;;  %s316_s17 = scalar_lea.vmem %s1292_s7, %s924_s13 }
  0x11   : > { %v1108_v6 = vld [vmem:[%s306_s16] sm:$0xff]  ;;  %v1110_v7 = vld [vmem:[%s306_s16 + $0x8] sm:$0xff] }
  0x12   : > { %v322_v9 = vrot.slane %v1108_v6, 4  ;;  %v328_v10 = vrot.slane %v1110_v7, 4  ;;  %414 = vperm.xlu1 %961, %v396_v14  }
  0x14   : > { %739 = vperm.xlu0 %960, %v736_v5   ;;  %v323_v12 = vadd.f32 %v322_v9, %v1108_v6  ;;  %v329_v13 = vadd.f32 %v328_v10, %v1110_v7  ;;  %v392_v5 = vld [vmem:[%s1286_s1 + $0x18] sm:$0xff] }
  0x16   : > { %v324_v15 = vrot.slane %v323_v12, 2  ;;  %v330_v16 = vrot.slane %v329_v13, 2 }
  0x18   : > { %v325_v17 = vadd.f32 %v324_v15, %v323_v12  ;;  %v331_v18 = vadd.f32 %v330_v16, %v329_v13 }
  0x1a   : > { %v326_v19 = vrot.slane %v325_v17, 1  ;;  %v332_v20 = vrot.slane %v331_v18, 1 }
  0x1c   : > { %v327_v21 = vadd.f32 %v326_v19, %v325_v17  ;;  %v333_v22 = vadd.f32 %v332_v20, %v331_v18 }
  0x1e   : > { %v335_v23 = vmul.f32 0.125, %v327_v21  ;;  %v336_v24 = vmul.f32 0.125, %v333_v22 }
  0x20   : > { %v337_v25 = vsub.f32 %v1108_v6, %v335_v23  ;;  %v338_v26 = vsub.f32 %v1110_v7, %v336_v24 }
  0x22   : > { %v339_v27 = vmul.f32 %v337_v25, %v337_v25  ;;  %v340_v28 = vmul.f32 %v338_v26, %v338_v26 }
  0x24   : > { %v341_v29 = vrot.slane %v339_v27, 4  ;;  %v347_v30 = vrot.slane %v340_v28, 4 }
  0x26   : > { %v342_v31 = vadd.f32 %v341_v29, %v339_v27  ;;  %v348_v32 = vadd.f32 %v347_v30, %v340_v28 }
  0x28   : > { %v343_v33 = vrot.slane %v342_v31, 2  ;;  %v349_v34 = vrot.slane %v348_v32, 2 }
  0x2a   : > { %v344_v35 = vadd.f32 %v343_v33, %v342_v31  ;;  %v350_v36 = vadd.f32 %v349_v34, %v348_v32 }
  0x2c   : > { %v345_v37 = vrot.slane %v344_v35, 1  ;;  %v351_v38 = vrot.slane %v350_v36, 1 }
  0x2e   : > { %v346_v39 = vadd.f32 %v345_v37, %v344_v35  ;;  %v352_v40 = vadd.f32 %v351_v38, %v350_v36 }
  0x30   : > { %v353_v41 = vmul.f32 0.125, %v346_v39  ;;  %v354_v42 = vmul.f32 0.125, %v352_v40 }
  0x32   : > { %962 = vrsqrt.f32 %v353_v41  ;;  %vm357_vm0 = vcmp.eq.f32.partialorder %v353_v41, inf  ;;  %vm364_vm1 = vcmp.eq.f32.partialorder %v354_v42, inf  ;;  %v360_v47 = vand.u32 2147483648, %v353_v41 }
  0x33   : > { %964 = vrsqrt.f32 %v354_v42  ;;  %vm359_vm2 = vcmp.eq.f32.partialorder %v353_v41, 0.0  ;;  %v367_v49 = vand.u32 2147483648, %v354_v42  ;;  %vm366_vm3 = vcmp.eq.f32.partialorder %v354_v42, 0.0 }
  0x3c   : > { %v963_v43 = vpop.eup %962 }
  0x3d   : > { %v965_v44 = vpop.eup %964  ;;  %v356_v45 = vmul.f32 %v963_v43, %v353_v41 }
  0x3e   : > { %v363_v46 = vmul.f32 %v965_v44, %v354_v42 }
  0x3f   : > { %v358_v48 = vsel %vm357_vm0, %v353_v41, %v356_v45 }
  0x40   : > { %v365_v50 = vsel %vm364_vm1, %v354_v42, %v363_v46  ;;  %v361_v51 = vsel %vm359_vm2, %v360_v47, %v358_v48 }
  0x41   : > { %v368_v52 = vsel %vm366_vm3, %v367_v49, %v365_v50  ;;  %v369_v53 = vadd.f32 1e-05, %v361_v51 }
  0x42   : > { %v370_v54 = vadd.f32 1e-05, %v368_v52 }
  0x43   : > { %966 = vrcp.f32 %v369_v53 }
  0x44   : > { %968 = vrcp.f32 %v370_v54 }
  0x4d   : > { %v967_v55 = vpop.eup %966 }
  0x4e   : > { %v969_v56 = vpop.eup %968  ;;  %v373_v57 = vmul.f32 %v967_v55, %v337_v25 }
  0x4f   : > { %v374_v58 = vmul.f32 %v969_v56, %v338_v26 }
  0x87   : > { %v378_v59 = vpop.permute.xlu0 %377 }
  0x88   : > { %v380_v60 = vmul.f32 %v378_v59, %v373_v57  ;;  %v381_v61 = vmul.f32 %v378_v59, %v374_v58 }
  0x89   : > { %v400_v8 = vpop.permute.xlu1 %399 }
  0x8b   : > { %v385_v62 = vpop.permute.xlu0 %384 }
  0x8c   : > { %v388_v63 = vadd.f32 %v385_v62, %v381_v61  ;;  %v387_v0 = vadd.f32 %v385_v62, %v380_v60 }
  0x8d   : > { %v405_v14 = vpop.permute.xlu1 %404 }
  0x8e   : > { %430 = vmatprep.subr.mxu0 %v388_v63 }
  0x8f   : > { %431 = vmatpush1.msra.mxu0 %v387_v0  ;;  %v410_v32 = vpop.permute.xlu0 %409 }
  0x90   : > { %917 = vmatmul.mubr.msk.f32.vlgmr.msra.gmra.mrb[0].mxu0 %vm417_vm4, %v389_v1 }
  0x91   : > { %500 = vmatprep.mubr.f32.mxu0 %v1027_v4  ;;  %v415_v43 = vpop.permute.xlu1 %414 }
  0x94   : > { %918 = vmatmul.mubr.msk.f32.gmra.mrb[2].mxu0 %vm417_vm4, %v390_v2 }
  0x95   : > { %506 = vmatprep.mubr.f32.mxu0 %v1027_v4 }
  0x98   : > { %919 = vmatmul.mubr.msk.f32.gmra.mrb[4].mxu0 %vm417_vm4, %v391_v3 }
  0x99   : > { %512 = vmatprep.mubr.f32.mxu0 %v1027_v4 }
  0x9c   : > { %920 = vmatmul.mubr.msk.f32.gmra.mrb[6].mxu0 %vm417_vm4, %v392_v5 }
 0x163   : > { %v496_v9 = vpop.f32.mrb[0].mxu0 }
 0x164   : > { %v497_v10 = vadd.f32 %v496_v9, %v400_v8  ;;  %v498_v11 = vpop.f32.mrb[1].mxu0 }
 0x165   : > { %v499_v12 = vadd.f32 %v498_v11, %v400_v8 }
 0x166   : > { %v1142_v13 = vmul.f32 0.70710677, %v497_v10  ;;  %v1167_v47 = vmul.f32 0.5, %v497_v10 }
 0x167   : > { %v1144_v15 = vmul.f32 0.70710677, %v499_v12  ;;  %v502_v16 = vpop.f32.mrb[2].mxu0  ;;  %v1172_v52 = vmul.f32 0.5, %v499_v12 }
 0x168   : > { %v535_v17 = vand.u32 2147483647, %v1142_v13  ;;  %v503_v18 = vadd.f32 %v502_v16, %v405_v14  ;;  %v504_v4 = vpop.f32.mrb[3].mxu0  ;;  %vm695_vm6 = vcmp.lt.f32.partialorder %v1142_v13, 0.0 }
 0x169   : > { %v536_v19 = vand.u32 2147483647, %v1144_v15  ;;  %v505_v20 = vadd.f32 %v504_v4, %v405_v14  ;;  %vm696_vm5 = vcmp.lt.f32.partialorder %v1144_v15, 0.0 }
 0x16a   : > { %v543_v21 = vmul.f32 0.3275911, %v535_v17  ;;  %v1148_v22 = vmul.f32 0.70710677, %v503_v18  ;;  %v647_v40 = vsub.f32 0.0, %v535_v17  ;;  %v1177_v56 = vmul.f32 0.5, %v503_v18 }
 0x16b   : > { %v544_v23 = vmul.f32 0.3275911, %v536_v19  ;;  %v1150_v24 = vmul.f32 0.70710677, %v505_v20  ;;  %v508_v27 = vpop.f32.mrb[4].mxu0  ;;  %v648_v42 = vsub.f32 0.0, %v536_v19 }
 0x16c   : > { %v551_v25 = vadd.f32 1.0, %v543_v21  ;;  %v537_v26 = vand.u32 2147483647, %v1148_v22  ;;  %v510_v30 = vpop.f32.mrb[5].mxu0  ;;  %v1154_v36 = vadd.f32 %v508_v27, %v410_v32  ;;  %v655_v51 = vmul.f32 %v647_v40, %v535_v17 }
 0x16d   : > { %v552_v28 = vadd.f32 1.0, %v544_v23  ;;  %v538_v29 = vand.u32 2147483647, %v1150_v24  ;;  %v1156_v39 = vadd.f32 %v510_v30, %v410_v32  ;;  %v656_v55 = vmul.f32 %v648_v42, %v536_v19 }
 0x16e   : > { %v545_v31 = vmul.f32 0.3275911, %v537_v26  ;;  %v1159_v41 = vmul.f32 0.70710677, %v1154_v36  ;;  %v649_v48 = vsub.f32 0.0, %v537_v26  ;;  %v1182_v59 = vmul.f32 0.5, %v505_v20 }
 0x16f   : > { %970 = vrcp.f32 %v552_v28  ;;  %v546_v33 = vmul.f32 0.3275911, %v538_v29  ;;  %v514_v34 = vpop.f32.mrb[6].mxu0  ;;  %v1162_v44 = vmul.f32 0.70710677, %v1156_v39  ;;  %v650_v60 = vsub.f32 0.0, %v538_v29 }
 0x170   : > { %972 = vrcp.f32 %v551_v25  ;;  %v553_v35 = vadd.f32 1.0, %v545_v31  ;;  %v516_v37 = vpop.f32.mrb[7].mxu0  ;;  %v539_v45 = vand.u32 2147483647, %v1159_v41  ;;  %v1165_v46 = vadd.f32 %v514_v34, %v415_v43 }
 0x171   : > { %v554_v38 = vadd.f32 1.0, %v546_v33  ;;  %v540_v49 = vand.u32 2147483647, %v1162_v44  ;;  %v1170_v50 = vadd.f32 %v516_v37, %v415_v43  ;;  %v657_v0 = vmul.f32 %v649_v48, %v537_v26 }
 0x172   : > { %974 = vrcp.f32 %v553_v35  ;;  %v547_v53 = vmul.f32 0.3275911, %v539_v45  ;;  %v1175_v54 = vmul.f32 0.70710677, %v1165_v46  ;;  %v651_v1 = vsub.f32 0.0, %v539_v45 }
 0x173   : > { %976 = vrcp.f32 %v554_v38  ;;  %v548_v57 = vmul.f32 0.3275911, %v540_v49  ;;  %v1180_v58 = vmul.f32 0.70710677, %v1170_v50  ;;  %v663_v8 = vmul.f32 1.442695, %v655_v51 }
 0x174   : > { %v555_v61 = vadd.f32 1.0, %v547_v53  ;;  %v541_v62 = vand.u32 2147483647, %v1175_v54  ;;  %v652_v9 = vsub.f32 0.0, %v540_v49  ;;  %v665_v11 = vmul.f32 1.442695, %v656_v55 }
 0x175   : > { %v556_v2 = vadd.f32 1.0, %v548_v57  ;;  %v542_v3 = vand.u32 2147483647, %v1180_v58  ;;  %v658_v17 = vmul.f32 %v650_v60, %v538_v29  ;;  %v667_v21 = vmul.f32 1.442695, %v657_v0 }
 0x176   : > { %978 = vrcp.f32 %v555_v61  ;;  %v549_v10 = vmul.f32 0.3275911, %v541_v62  ;;  %v653_v12 = vsub.f32 0.0, %v541_v62  ;;  %v659_v23 = vmul.f32 %v651_v1, %v539_v45 }
 0x177   : > { %980 = vrcp.f32 %v556_v2  ;;  %v550_v14 = vmul.f32 0.3275911, %v542_v3  ;;  %v654_v4 = vsub.f32 0.0, %v542_v3  ;;  %v660_v27 = vmul.f32 %v652_v9, %v540_v49 }
 0x178   : > { %v557_v18 = vadd.f32 1.0, %v549_v10  ;;  %v661_v31 = vmul.f32 %v653_v12, %v541_v62  ;;  %v669_v33 = vmul.f32 1.442695, %v658_v17  ;;  %v671_v38 = vmul.f32 1.442695, %v659_v23 }
 0x179   : > { %v1185_v63 = vpop.eup %970  ;;  %v558_v25 = vadd.f32 1.0, %v550_v14  ;;  %v662_v34 = vmul.f32 %v654_v4, %v542_v3  ;;  %v673_v43 = vmul.f32 1.442695, %v660_v27  ;;  %vm698_vm7 = vcmp.lt.f32.partialorder %v1150_v24, 0.0 }
 0x17a   : > { %v1188_v5 = vpop.eup %972  ;;  %v576_v19 = vmul.f32 1.0614054, %v1185_v63  ;;  %982 = vrcp.f32 %v557_v18  ;;  %v675_v49 = vmul.f32 1.442695, %v661_v31  ;;  %vm697_vm8 = vcmp.lt.f32.partialorder %v1148_v22, 0.0 }
 0x17b   : > { %v575_v26 = vmul.f32 1.0614054, %v1188_v5  ;;  %984 = vrcp.f32 %v558_v25  ;;  %v677_v57 = vmul.f32 1.442695, %v662_v34  ;;  %vm699_vm9 = vcmp.lt.f32.partialorder %v1159_v41, 0.0 }
 0x17c   : > { %v1190_v16 = vpop.eup %974  ;;  %v584_v30 = vadd.f32 -1.4531521, %v576_v19  ;;  %986 = vpow2.f32 %v663_v8  ;;  %vm700_vm10 = vcmp.lt.f32.partialorder %v1162_v44, 0.0  ;;  %vm701_vm11 = vcmp.lt.f32.partialorder %v1175_v54, 0.0 }
 0x17d   : > { %v1193_v20 = vpop.eup %976  ;;  %v577_v29 = vmul.f32 1.0614054, %v1190_v16  ;;  %v583_v32 = vadd.f32 -1.4531521, %v575_v26  ;;  %988 = vpow2.f32 %v665_v11  ;;  %vm702_vm12 = vcmp.lt.f32.partialorder %v1180_v58, 0.0 }
 0x17e   : > { %v578_v28 = vmul.f32 1.0614054, %v1193_v20  ;;  %v592_v37 = vmul.f32 %v1185_v63, %v584_v30  ;;  %990 = vpow2.f32 %v667_v21  ;;  %v523_v41 = vmul.f32 0.5, %v1154_v36  ;;  %v735_v36 = vld [vmem:[%s1288_s3] sm:$0xff] }
 0x17f   : > { %v585_v40 = vadd.f32 -1.4531521, %v577_v29  ;;  %v591_v42 = vmul.f32 %v1188_v5, %v583_v32  ;;  %992 = vpow2.f32 %v669_v33 }
 0x180   : > { %v586_v35 = vadd.f32 -1.4531521, %v578_v28  ;;  %v600_v48 = vadd.f32 1.4214138, %v592_v37  ;;  %v1202_v55 = vpop.eup %978  ;;  %994 = vpow2.f32 %v671_v38 }
 0x181   : > { %v593_v51 = vmul.f32 %v1190_v16, %v585_v40  ;;  %v599_v53 = vadd.f32 1.4214138, %v591_v42  ;;  %v1205_v62 = vpop.eup %980  ;;  %v579_v0 = vmul.f32 1.0614054, %v1202_v55  ;;  %996 = vpow2.f32 %v673_v43 }
 0x182   : > { %v594_v45 = vmul.f32 %v1193_v20, %v586_v35  ;;  %v608_v61 = vmul.f32 %v1185_v63, %v600_v48  ;;  %v580_v3 = vmul.f32 1.0614054, %v1205_v62  ;;  %998 = vpow2.f32 %v675_v49 }
 0x183   : > { %v601_v1 = vadd.f32 1.4214138, %v593_v51  ;;  %v607_v2 = vmul.f32 %v1188_v5, %v599_v53  ;;  %v587_v10 = vadd.f32 -1.4531521, %v579_v0  ;;  %1000 = vpow2.f32 %v677_v57 }
 0x184   : > { %v602_v60 = vadd.f32 1.4214138, %v594_v45  ;;  %v616_v9 = vadd.f32 -0.28449672, %v608_v61  ;;  %v1212_v14 = vpop.eup %982  ;;  %v588_v17 = vadd.f32 -1.4531521, %v580_v3 }
 0x185   : > { %v609_v11 = vmul.f32 %v1190_v16, %v601_v1  ;;  %v615_v12 = vadd.f32 -0.28449672, %v607_v2  ;;  %v1215_v19 = vpop.eup %984  ;;  %v595_v21 = vmul.f32 %v1202_v55, %v587_v10  ;;  %v581_v23 = vmul.f32 1.0614054, %v1212_v14 }
 0x186   : > { %v610_v8 = vmul.f32 %v1193_v20, %v602_v60  ;;  %v624_v4 = vmul.f32 %v1185_v63, %v616_v9  ;;  %v596_v27 = vmul.f32 %v1205_v62, %v588_v17  ;;  %v582_v28 = vmul.f32 1.0614054, %v1215_v19  ;;  %v987_v29 = vpop.eup %986 }
 0x187   : > { %v617_v25 = vadd.f32 -0.28449672, %v609_v11  ;;  %v623_v26 = vmul.f32 %v1188_v5, %v615_v12  ;;  %v603_v32 = vadd.f32 1.4214138, %v595_v21  ;;  %v589_v33 = vadd.f32 -1.4531521, %v581_v23  ;;  %v989_v37 = vpop.eup %988 }
 0x188   : > { %v618_v18 = vadd.f32 -0.28449672, %v610_v8  ;;  %v632_v31 = vadd.f32 0.2548296, %v624_v4  ;;  %v604_v38 = vadd.f32 1.4214138, %v596_v27  ;;  %v991_v45 = vpop.eup %990 }
 0x189   : > { %v625_v34 = vmul.f32 %v1190_v16, %v617_v25  ;;  %v631_v35 = vadd.f32 0.2548296, %v623_v26  ;;  %v590_v40 = vadd.f32 -1.4531521, %v582_v28  ;;  %v611_v48 = vmul.f32 %v1202_v55, %v603_v32  ;;  %v993_v57 = vpop.eup %992 }
 0x18a   : > { %v626_v30 = vmul.f32 %v1193_v20, %v618_v18  ;;  %v640_v43 = vmul.f32 %v1185_v63, %v632_v31  ;;  %v597_v49 = vmul.f32 %v1212_v14, %v589_v33  ;;  %v612_v60 = vmul.f32 %v1205_v62, %v604_v38  ;;  %v995_v1 = vpop.eup %994 }
 0x18b   : > { %v633_v51 = vadd.f32 0.2548296, %v625_v34  ;;  %v639_v53 = vmul.f32 %v1188_v5, %v631_v35  ;;  %v598_v61 = vmul.f32 %v1215_v19, %v590_v40  ;;  %v619_v2 = vadd.f32 -0.28449672, %v611_v48  ;;  %v997_v10 = vpop.eup %996 }
 0x18c   : > { %v634_v42 = vadd.f32 0.2548296, %v626_v30  ;;  %v680_v63 = vmul.f32 %v989_v37, %v640_v43  ;;  %v605_v3 = vadd.f32 1.4214138, %v597_v49  ;;  %v620_v11 = vadd.f32 -0.28449672, %v612_v60  ;;  %v999_v18 = vpop.eup %998 }
 0x18d   : > { %v641_v8 = vmul.f32 %v1190_v16, %v633_v51  ;;  %v679_v9 = vmul.f32 %v987_v29, %v639_v53  ;;  %v606_v12 = vadd.f32 1.4214138, %v598_v61  ;;  %v627_v4 = vmul.f32 %v1202_v55, %v619_v2  ;;  %v1001_v25 = vpop.eup %1000 }
 0x18e   : > { %v642_v0 = vmul.f32 %v1193_v20, %v634_v42  ;;  %v688_v17 = vsub.f32 1.0, %v680_v63  ;;  %v613_v21 = vmul.f32 %v1212_v14, %v605_v3  ;;  %v628_v26 = vmul.f32 %v1205_v62, %v620_v11 }
 0x18f   : > { %v681_v20 = vmul.f32 %v991_v45, %v641_v8  ;;  %v687_v23 = vsub.f32 1.0, %v679_v9  ;;  %v614_v27 = vmul.f32 %v1215_v19, %v606_v12  ;;  %v635_v30 = vadd.f32 0.2548296, %v627_v4 }
 0x190   : > { %v682_v5 = vmul.f32 %v993_v57, %v642_v0  ;;  %v704_v16 = vsub.f32 0.0, %v688_v17  ;;  %v621_v31 = vadd.f32 -0.28449672, %v613_v21  ;;  %v636_v33 = vadd.f32 0.2548296, %v628_v26 }
 0x191   : > { %v689_v29 = vsub.f32 1.0, %v681_v20  ;;  %v703_v32 = vsub.f32 0.0, %v687_v23  ;;  %v622_v34 = vadd.f32 -0.28449672, %v614_v27  ;;  %v643_v38 = vmul.f32 %v1202_v55, %v635_v30 }
 0x192   : > { %v690_v28 = vsub.f32 1.0, %v682_v5  ;;  %v712_v37 = vsel %vm696_vm5, %v704_v16, %v688_v17  ;;  %v629_v40 = vmul.f32 %v1212_v14, %v621_v31  ;;  %v644_v45 = vmul.f32 %v1205_v62, %v636_v33 }
 0x193   : > { %v720_v42 = vadd.f32 1.0, %v712_v37  ;;  %v705_v43 = vsub.f32 0.0, %v689_v29  ;;  %v630_v48 = vmul.f32 %v1215_v19, %v622_v34  ;;  %v711_v51 = vsel %vm695_vm6, %v703_v32, %v687_v23 }
 0x194   : > { %v706_v35 = vsub.f32 0.0, %v690_v28  ;;  %v683_v53 = vmul.f32 %v995_v1, %v643_v38  ;;  %v637_v57 = vadd.f32 0.2548296, %v629_v40  ;;  %v684_v55 = vmul.f32 %v997_v10, %v644_v45 }
 0x195   : > { %v728_v60 = vmul.f32 %v720_v42, %v1172_v52  ;;  %v638_v61 = vadd.f32 0.2548296, %v630_v48  ;;  %v713_v0 = vsel %vm697_vm8, %v705_v43, %v689_v29  ;;  %v719_v63 = vadd.f32 1.0, %v711_v51 }
 0x196   : > { %v714_v49 = vsel %vm698_vm7, %v706_v35, %v690_v28  ;;  %v691_v62 = vsub.f32 1.0, %v683_v53  ;;  %v645_v2 = vmul.f32 %v1212_v14, %v637_v57  ;;  %v721_v3 = vadd.f32 1.0, %v713_v0 }
 0x197   : > { %v722_v15 = vadd.f32 1.0, %v714_v49  ;;  %v692_v8 = vsub.f32 1.0, %v684_v55  ;;  %v646_v13 = vmul.f32 %v1215_v19, %v638_v61  ;;  %v727_v1 = vmul.f32 %v719_v63, %v1167_v47 }
 0x198   : > { %v707_v9 = vsub.f32 0.0, %v691_v62  ;;  %v685_v11 = vmul.f32 %v999_v18, %v645_v2  ;;  %v729_v10 = vmul.f32 %v721_v3, %v1177_v56  ;;  %v525_v20 = vmul.f32 0.5, %v1165_v46  ;;  %v740_v46 = vpop.permute.xlu0 %739 }
 0x199   : > { %v730_v24 = vmul.f32 %v722_v15, %v1182_v59  ;;  %v708_v22 = vsub.f32 0.0, %v692_v8  ;;  %v686_v12 = vmul.f32 %v1001_v25, %v646_v13  ;;  %v524_v25 = vmul.f32 0.5, %v1156_v39 }
 0x19a   : > { %v715_v5 = vsel %vm699_vm9, %v707_v9, %v691_v62  ;;  %v693_v14 = vsub.f32 1.0, %v685_v11  ;;  %v928_v59 = vpack.c.bf16 %v729_v10, %v727_v1  ;;  %v526_v26 = vmul.f32 0.5, %v1170_v50 }
 0x19b   : > { %v926_v52 = vpack.c.bf16 %v730_v24, %v728_v60  ;;  %v716_v17 = vsel %vm700_vm10, %v708_v22, %v692_v8  ;;  %v694_v4 = vsub.f32 1.0, %v686_v12  ;;  %v723_v47 = vadd.f32 1.0, %v715_v5 }
 0x19c   : > { %v709_v19 = vsub.f32 0.0, %v693_v14  ;;  %v724_v21 = vadd.f32 1.0, %v716_v17 }
 0x19d   : > { %927 = vmatprep.subr.bf16.mxu1 %v926_v52  ;;  %v710_v18 = vsub.f32 0.0, %v694_v4  ;;  %v731_v28 = vmul.f32 %v723_v47, %v523_v41 }
 0x19e   : > { %929 = vmatpush1.bf16.msra.mxu1 %v928_v59  ;;  %v717_v56 = vsel %vm701_vm11, %v709_v19, %v693_v14  ;;  %v732_v54 = vmul.f32 %v724_v21, %v524_v25 }
 0x19f   : > { %v725_v44 = vadd.f32 1.0, %v717_v56  ;;  %v718_v23 = vsel %vm702_vm12, %v710_v18, %v694_v4 }
 0x1a0   : > { %v726_v27 = vadd.f32 1.0, %v718_v23 }
 0x1a1   : > { %v733_v16 = vmul.f32 %v725_v44, %v525_v20 }
 0x1a2   : > { %v734_v30 = vmul.f32 %v726_v27, %v526_v26 }
 0x1a3   : > { %v932_v31 = vpack.c.bf16 %v733_v16, %v731_v28 }
 0x1a4   : > { %v930_v29 = vpack.c.bf16 %v734_v30, %v732_v54 }
 0x1a6   : > { %931 = vmatprep.subr.bf16.mxu1 %v930_v29 }
 0x1a7   : > { %933 = vmatpush1.bf16.msra.mxu1 %v932_v31 }
 0x1aa   : > { %921 = vmatmul.mubr.msk.f32.vlgmr.msra.gmra.mrb[0].mxu1 %vm742_vm13, %v735_v36 }
 0x27d   : > { %v812_v39 = vpop.f32.mrb[0].mxu1 }
 0x27e   : > { %v813_v58 = vadd.f32 %v812_v39, %v740_v46  ;;  %v814_v50 = vpop.f32.mrb[1].mxu1 }
 0x27f   : > { %v815_v32 = vadd.f32 %v814_v50, %v740_v46 }
 0x280   : > { %v817_v33 = vadd.f32 %v813_v58, %v1108_v6 }
 0x281   : > { %v818_v34 = vadd.f32 %v815_v32, %v1110_v7 }
 0x282   : > { %819 = vst [vmem:[%s316_s17] sm:$0xff] %v817_v33 }
 0x283   : > { %820 = vst [vmem:[%s316_s17 + $0x8] sm:$0xff] %v818_v34 }
 0x284 PF: > { %s17_s26 = sadd.s32 1, %s1024_s26   ;;  %s1293_s24 = smov %s1020_s25 }
 0x285   : > { %p14_p5 = scmp.ge.s32.totalorder %s17_s26, 4   ;;  %s1294_s25 = smov %s1296_s27 }
 0x287   :  { %16 = sbr.rel (!%p14_p5) target bundleno = 2 (0x2), region = 78 }

</bundles_post_ra>
